<compile_context>
chip_gen: v5e
topology: v5e:2x2
jax: 0.10.0
libtpu: 0.0.40
codegen_flags: <defaults>
</compile_context>

<pallas_src>
import math

import jax
import jax.numpy as jnp
from jax.experimental import pallas as pl
from jax.experimental.pallas import tpu as pltpu


def build_ridgelet_filters(scales, directions, positions,
                           out_channels, kernel_size, num_kernels):
    """(Cout, K, K) ridgelet filter bank, summed over the num_kernels ridgelets.

    Matches RidgeletLayer.create_ridgelet_kernel except that the broadcast over
    in_channels is folded into the Cin-sum of the input (exact algebra).
    """
    center = kernel_size // 2
    coords = jnp.arange(kernel_size, dtype=jnp.float32) - center
    # torch.meshgrid default indexing='ij': x1 varies along rows, x2 along cols
    x1 = jnp.broadcast_to(coords[:, None], (kernel_size, kernel_size))
    x2 = jnp.broadcast_to(coords[None, :], (kernel_size, kernel_size))
    t = (x1[None, :, :] * jnp.cos(directions)[:, None, None]
         + x2[None, :, :] * jnp.sin(directions)[:, None, None]
         - positions[:, None, None]) / scales[:, None, None]
    r = jnp.exp(-(t ** 2) / 2.0) - 0.5 * jnp.exp(-(t ** 2) / 8.0)
    # sum the num_kernels ridgelets belonging to each output channel
    return r.reshape(out_channels, num_kernels, kernel_size, kernel_size).sum(axis=1)


def _make_conv_kernel(H, W, K, Cin, Cout):
    """'same' conv of the Cin-summed image with (Cout, K, K) filters."""
    pad = K // 2
    KK = K * K
    Hp, Wp = H + 2 * pad, W + 2 * pad

    def conv_kernel(x_ref, w_ref, o_ref, xpad_ref):
        # x_ref:    (1, Cin, H, W)   VMEM  — one batch element, NCHW (no transpose)
        # w_ref:    (Cout*K*K,)      SMEM  — ridgelet filters, scalar-indexed
        # o_ref:    (1, Cout, H, W)  VMEM  — output block, NCHW
        # xpad_ref: (Hp, Wp)         VMEM scratch — zero-padded Cin-summed image

        # --- sum over input channels (filter is identical across Cin) ---
        xs = x_ref[0, 0].astype(jnp.float32)
        for c in range(1, Cin):
            xs = xs + x_ref[0, c].astype(jnp.float32)

        # --- in-kernel 'same' padding into a zero-initialized scratch ---
        xpad_ref[...] = jnp.zeros((Hp, Wp), jnp.float32)
        xpad_ref[pad:pad + H, pad:pad + W] = xs

        # --- load each of the K*K shifted patches once; reuse for all Cout ---
        patches = [xpad_ref[kh:kh + H, kw:kw + W]          # (H, W) each
                   for kh in range(K) for kw in range(K)]

        # --- K*K*Cout scalar-broadcast FMAs on the VPU ---
        for o in range(Cout):
            acc = patches[0] * w_ref[o * KK + 0]
            for t in range(1, KK):
                acc = acc + patches[t] * w_ref[o * KK + t]
            o_ref[0, o, :, :] = acc.astype(o_ref.dtype)

    return conv_kernel


def ridgelet_forward(x_nchw, scales, directions, positions, *,
                     in_channels, out_channels, kernel_size, num_kernels):
    N, C, H, W = x_nchw.shape
    assert C == in_channels
    # F.conv2d with padding=K//2 only preserves HxW for odd K.
    assert kernel_size % 2 == 1, "kernel_size must be odd for 'same' output size"
    pad = kernel_size // 2

    # Filter construction is tiny (Cout*K*K values) — plain-JAX glue.
    r = build_ridgelet_filters(scales, directions, positions,
                               out_channels, kernel_size, num_kernels)
    w_flat = r.reshape(out_channels * kernel_size * kernel_size).astype(jnp.float32)

    kern = _make_conv_kernel(H, W, kernel_size, in_channels, out_channels)

    out = pl.pallas_call(
        kern,
        out_shape=jax.ShapeDtypeStruct((N, out_channels, H, W), x_nchw.dtype),
        grid_spec=pltpu.PrefetchScalarGridSpec(
            num_scalar_prefetch=0,
            grid=(N,),
            in_specs=[
                pl.BlockSpec((1, in_channels, H, W), lambda n: (n, 0, 0, 0)),
                pl.BlockSpec(memory_space=pltpu.MemorySpace.SMEM),
            ],
            out_specs=pl.BlockSpec((1, out_channels, H, W),
                                   lambda n: (n, 0, 0, 0)),
            scratch_shapes=[pltpu.VMEM((H + 2 * pad, W + 2 * pad), jnp.float32)],
        ),
        compiler_params=pltpu.CompilerParams(dimension_semantics=("parallel",)),
    )(x_nchw, w_flat)
    return out


if __name__ == "__main__":
    # Small shapes consistent with the module: N=2, Cin=4, H=W=16, Cout=8, K=3.
    N, Cin, H, W = 2, 4, 16, 16
    Cout, K, NK = 8, 3, 8

    key = jax.random.PRNGKey(0)
    x = jax.random.normal(key, (N, Cin, H, W), dtype=jnp.float32)

    # Deterministic parameter init exactly as in RidgeletLayer.__init__
    scales = jnp.ones((Cout * NK,), dtype=jnp.float32)
    directions = jnp.linspace(0.0, math.pi, Cout * NK, dtype=jnp.float32)
    positions = jnp.zeros((Cout * NK,), dtype=jnp.float32)

    out = ridgelet_forward(x, scales, directions, positions,
                           in_channels=Cin, out_channels=Cout,
                           kernel_size=K, num_kernels=NK)
    out = jax.block_until_ready(out)

    # Reference: full OIHW ridgelet weights (broadcast over Cin) through XLA conv,
    # i.e. exactly F.conv2d(x, kernel, padding=K//2) semantics.
    r = build_ridgelet_filters(scales, directions, positions, Cout, K, NK)
    w_oihw = jnp.broadcast_to(r[:, None, :, :], (Cout, Cin, K, K))
    ref = jax.lax.conv_general_dilated(
        x, w_oihw, window_strides=(1, 1),
        padding=((K // 2, K // 2), (K // 2, K // 2)),
        dimension_numbers=("NCHW", "OIHW", "NCHW"))
    ref = jax.block_until_ready(ref)

    assert out.shape == (N, Cout, H, W), out.shape
    max_err = float(jnp.max(jnp.abs(out - ref)))
    assert jnp.allclose(out, ref, atol=1e-3, rtol=1e-3), max_err

    print("KERNEL_OK")
</pallas_src>

<mosaic_0001>
module attributes {stable_mosaic.version = 11 : i64} {
  func.func @conv_kernel(%arg0: i32, %arg1: memref<1x4x16x16xf32, #tpu.memory_space<vmem>>, %arg2: memref<72xf32, #tpu.memory_space<smem>>, %arg3: memref<1x8x16x16xf32, #tpu.memory_space<vmem>>, %arg4: memref<18x18xf32, #tpu.memory_space<vmem>>) attributes {dimension_semantics = [#tpu.dimension_semantics<parallel>], iteration_bounds = array<i64: 2>, scalar_prefetch = 0 : i64, scratch_operands = 1 : i64, tpu.core_type = #tpu.core_type<tc>, window_params = [{transform_indices = @transform_0, window_bounds = array<i64: 1, 4, 16, 16>}, {transform_indices = @transform_1, window_bounds = array<i64: 72>}, {transform_indices = @transform_2, window_bounds = array<i64: 1, 8, 16, 16>}]} {
    %c0 = arith.constant 0 : index
    %c0_0 = arith.constant 0 : index
    %c0_1 = arith.constant 0 : index
    %c0_2 = arith.constant 0 : index
    %0 = vector.load %arg1[%c0, %c0_0, %c0_1, %c0_2] : memref<1x4x16x16xf32, #tpu.memory_space<vmem>>, vector<1x1x16x16xf32>
    %1 = vector.shape_cast %0 : vector<1x1x16x16xf32> to vector<16x16xf32>
    %c0_3 = arith.constant 0 : index
    %c1 = arith.constant 1 : index
    %c0_4 = arith.constant 0 : index
    %c0_5 = arith.constant 0 : index
    %2 = vector.load %arg1[%c0_3, %c1, %c0_4, %c0_5] : memref<1x4x16x16xf32, #tpu.memory_space<vmem>>, vector<1x1x16x16xf32>
    %3 = vector.shape_cast %2 : vector<1x1x16x16xf32> to vector<16x16xf32>
    %4 = arith.addf %1, %3 : vector<16x16xf32>
    %c0_6 = arith.constant 0 : index
    %c2 = arith.constant 2 : index
    %c0_7 = arith.constant 0 : index
    %c0_8 = arith.constant 0 : index
    %5 = vector.load %arg1[%c0_6, %c2, %c0_7, %c0_8] : memref<1x4x16x16xf32, #tpu.memory_space<vmem>>, vector<1x1x16x16xf32>
    %6 = vector.shape_cast %5 : vector<1x1x16x16xf32> to vector<16x16xf32>
    %7 = arith.addf %4, %6 : vector<16x16xf32>
    %c0_9 = arith.constant 0 : index
    %c3 = arith.constant 3 : index
    %c0_10 = arith.constant 0 : index
    %c0_11 = arith.constant 0 : index
    %8 = vector.load %arg1[%c0_9, %c3, %c0_10, %c0_11] : memref<1x4x16x16xf32, #tpu.memory_space<vmem>>, vector<1x1x16x16xf32>
    %9 = vector.shape_cast %8 : vector<1x1x16x16xf32> to vector<16x16xf32>
    %10 = arith.addf %7, %9 : vector<16x16xf32>
    %cst = arith.constant 0.000000e+00 : f32
    %11 = vector.broadcast %cst : f32 to vector<18x18xf32>
    %c0_12 = arith.constant 0 : index
    %c0_13 = arith.constant 0 : index
    %12 = vector.load %arg4[%c0_12, %c0_13] : memref<18x18xf32, #tpu.memory_space<vmem>>, vector<18x18xf32>
    tpu.vector_store %arg4[%c0_12, %c0_13], %11 {strides = array<i32>} : memref<18x18xf32, #tpu.memory_space<vmem>>, vector<18x18xf32>,
    %c1_14 = arith.constant 1 : index
    %c1_15 = arith.constant 1 : index
    %13 = vector.load %arg4[%c1_14, %c1_15] : memref<18x18xf32, #tpu.memory_space<vmem>>, vector<16x16xf32>
    tpu.vector_store %arg4[%c1_14, %c1_15], %10 {strides = array<i32>} : memref<18x18xf32, #tpu.memory_space<vmem>>, vector<16x16xf32>,
    %c0_16 = arith.constant 0 : index
    %c0_17 = arith.constant 0 : index
    %14 = vector.load %arg4[%c0_16, %c0_17] : memref<18x18xf32, #tpu.memory_space<vmem>>, vector<16x16xf32>
    %c0_18 = arith.constant 0 : index
    %c1_19 = arith.constant 1 : index
    %15 = vector.load %arg4[%c0_18, %c1_19] : memref<18x18xf32, #tpu.memory_space<vmem>>, vector<16x16xf32>
    %c0_20 = arith.constant 0 : index
    %c2_21 = arith.constant 2 : index
    %16 = vector.load %arg4[%c0_20, %c2_21] : memref<18x18xf32, #tpu.memory_space<vmem>>, vector<16x16xf32>
    %c1_22 = arith.constant 1 : index
    %c0_23 = arith.constant 0 : index
    %17 = vector.load %arg4[%c1_22, %c0_23] : memref<18x18xf32, #tpu.memory_space<vmem>>, vector<16x16xf32>
    %c1_24 = arith.constant 1 : index
    %c1_25 = arith.constant 1 : index
    %18 = vector.load %arg4[%c1_24, %c1_25] : memref<18x18xf32, #tpu.memory_space<vmem>>, vector<16x16xf32>
    %c1_26 = arith.constant 1 : index
    %c2_27 = arith.constant 2 : index
    %19 = vector.load %arg4[%c1_26, %c2_27] : memref<18x18xf32, #tpu.memory_space<vmem>>, vector<16x16xf32>
    %c2_28 = arith.constant 2 : index
    %c0_29 = arith.constant 0 : index
    %20 = vector.load %arg4[%c2_28, %c0_29] : memref<18x18xf32, #tpu.memory_space<vmem>>, vector<16x16xf32>
    %c2_30 = arith.constant 2 : index
    %c1_31 = arith.constant 1 : index
    %21 = vector.load %arg4[%c2_30, %c1_31] : memref<18x18xf32, #tpu.memory_space<vmem>>, vector<16x16xf32>
    %c2_32 = arith.constant 2 : index
    %c2_33 = arith.constant 2 : index
    %22 = vector.load %arg4[%c2_32, %c2_33] : memref<18x18xf32, #tpu.memory_space<vmem>>, vector<16x16xf32>
    %c0_34 = arith.constant 0 : index
    %23 = memref.load %arg2[%c0_34] : memref<72xf32, #tpu.memory_space<smem>>
    %24 = vector.broadcast %23 : f32 to vector<16x16xf32>
    %25 = arith.mulf %14, %24 : vector<16x16xf32>
    %c1_35 = arith.constant 1 : index
    %26 = memref.load %arg2[%c1_35] : memref<72xf32, #tpu.memory_space<smem>>
    %27 = vector.broadcast %26 : f32 to vector<16x16xf32>
    %28 = arith.mulf %15, %27 : vector<16x16xf32>
    %29 = arith.addf %25, %28 : vector<16x16xf32>
    %c2_36 = arith.constant 2 : index
    %30 = memref.load %arg2[%c2_36] : memref<72xf32, #tpu.memory_space<smem>>
    %31 = vector.broadcast %30 : f32 to vector<16x16xf32>
    %32 = arith.mulf %16, %31 : vector<16x16xf32>
    %33 = arith.addf %29, %32 : vector<16x16xf32>
    %c3_37 = arith.constant 3 : index
    %34 = memref.load %arg2[%c3_37] : memref<72xf32, #tpu.memory_space<smem>>
    %35 = vector.broadcast %34 : f32 to vector<16x16xf32>
    %36 = arith.mulf %17, %35 : vector<16x16xf32>
    %37 = arith.addf %33, %36 : vector<16x16xf32>
    %c4 = arith.constant 4 : index
    %38 = memref.load %arg2[%c4] : memref<72xf32, #tpu.memory_space<smem>>
    %39 = vector.broadcast %38 : f32 to vector<16x16xf32>
    %40 = arith.mulf %18, %39 : vector<16x16xf32>
    %41 = arith.addf %37, %40 : vector<16x16xf32>
    %c5 = arith.constant 5 : index
    %42 = memref.load %arg2[%c5] : memref<72xf32, #tpu.memory_space<smem>>
    %43 = vector.broadcast %42 : f32 to vector<16x16xf32>
    %44 = arith.mulf %19, %43 : vector<16x16xf32>
    %45 = arith.addf %41, %44 : vector<16x16xf32>
    %c6 = arith.constant 6 : index
    %46 = memref.load %arg2[%c6] : memref<72xf32, #tpu.memory_space<smem>>
    %47 = vector.broadcast %46 : f32 to vector<16x16xf32>
    %48 = arith.mulf %20, %47 : vector<16x16xf32>
    %49 = arith.addf %45, %48 : vector<16x16xf32>
    %c7 = arith.constant 7 : index
    %50 = memref.load %arg2[%c7] : memref<72xf32, #tpu.memory_space<smem>>
    %51 = vector.broadcast %50 : f32 to vector<16x16xf32>
    %52 = arith.mulf %21, %51 : vector<16x16xf32>
    %53 = arith.addf %49, %52 : vector<16x16xf32>
    %c8 = arith.constant 8 : index
    %54 = memref.load %arg2[%c8] : memref<72xf32, #tpu.memory_space<smem>>
    %55 = vector.broadcast %54 : f32 to vector<16x16xf32>
    %56 = arith.mulf %22, %55 : vector<16x16xf32>
    %57 = arith.addf %53, %56 : vector<16x16xf32>
    %c0_38 = arith.constant 0 : index
    %c0_39 = arith.constant 0 : index
    %c0_40 = arith.constant 0 : index
    %c0_41 = arith.constant 0 : index
    %58 = vector.load %arg3[%c0_38, %c0_39, %c0_40, %c0_41] : memref<1x8x16x16xf32, #tpu.memory_space<vmem>>, vector<1x1x16x16xf32>
    %59 = vector.shape_cast %58 : vector<1x1x16x16xf32> to vector<16x16xf32>
    %60 = vector.shape_cast %57 : vector<16x16xf32> to vector<1x1x16x16xf32>
    tpu.vector_store %arg3[%c0_38, %c0_39, %c0_40, %c0_41], %60 {strides = array<i32>} : memref<1x8x16x16xf32, #tpu.memory_space<vmem>>, vector<1x1x16x16xf32>,
    %c9 = arith.constant 9 : index
    %61 = memref.load %arg2[%c9] : memref<72xf32, #tpu.memory_space<smem>>
    %62 = vector.broadcast %61 : f32 to vector<16x16xf32>
    %63 = arith.mulf %14, %62 : vector<16x16xf32>
    %c10 = arith.constant 10 : index
    %64 = memref.load %arg2[%c10] : memref<72xf32, #tpu.memory_space<smem>>
    %65 = vector.broadcast %64 : f32 to vector<16x16xf32>
    %66 = arith.mulf %15, %65 : vector<16x16xf32>
    %67 = arith.addf %63, %66 : vector<16x16xf32>
    %c11 = arith.constant 11 : index
    %68 = memref.load %arg2[%c11] : memref<72xf32, #tpu.memory_space<smem>>
    %69 = vector.broadcast %68 : f32 to vector<16x16xf32>
    %70 = arith.mulf %16, %69 : vector<16x16xf32>
    %71 = arith.addf %67, %70 : vector<16x16xf32>
    %c12 = arith.constant 12 : index
    %72 = memref.load %arg2[%c12] : memref<72xf32, #tpu.memory_space<smem>>
    %73 = vector.broadcast %72 : f32 to vector<16x16xf32>
    %74 = arith.mulf %17, %73 : vector<16x16xf32>
    %75 = arith.addf %71, %74 : vector<16x16xf32>
    %c13 = arith.constant 13 : index
    %76 = memref.load %arg2[%c13] : memref<72xf32, #tpu.memory_space<smem>>
    %77 = vector.broadcast %76 : f32 to vector<16x16xf32>
    %78 = arith.mulf %18, %77 : vector<16x16xf32>
    %79 = arith.addf %75, %78 : vector<16x16xf32>
    %c14 = arith.constant 14 : index
    %80 = memref.load %arg2[%c14] : memref<72xf32, #tpu.memory_space<smem>>
    %81 = vector.broadcast %80 : f32 to vector<16x16xf32>
    %82 = arith.mulf %19, %81 : vector<16x16xf32>
    %83 = arith.addf %79, %82 : vector<16x16xf32>
    %c15 = arith.constant 15 : index
    %84 = memref.load %arg2[%c15] : memref<72xf32, #tpu.memory_space<smem>>
    %85 = vector.broadcast %84 : f32 to vector<16x16xf32>
    %86 = arith.mulf %20, %85 : vector<16x16xf32>
    %87 = arith.addf %83, %86 : vector<16x16xf32>
    %c16 = arith.constant 16 : index
    %88 = memref.load %arg2[%c16] : memref<72xf32, #tpu.memory_space<smem>>
    %89 = vector.broadcast %88 : f32 to vector<16x16xf32>
    %90 = arith.mulf %21, %89 : vector<16x16xf32>
    %91 = arith.addf %87, %90 : vector<16x16xf32>
    %c17 = arith.constant 17 : index
    %92 = memref.load %arg2[%c17] : memref<72xf32, #tpu.memory_space<smem>>
    %93 = vector.broadcast %92 : f32 to vector<16x16xf32>
    %94 = arith.mulf %22, %93 : vector<16x16xf32>
    %95 = arith.addf %91, %94 : vector<16x16xf32>
    %c0_42 = arith.constant 0 : index
    %c1_43 = arith.constant 1 : index
    %c0_44 = arith.constant 0 : index
    %c0_45 = arith.constant 0 : index
    %96 = vector.load %arg3[%c0_42, %c1_43, %c0_44, %c0_45] : memref<1x8x16x16xf32, #tpu.memory_space<vmem>>, vector<1x1x16x16xf32>
    %97 = vector.shape_cast %96 : vector<1x1x16x16xf32> to vector<16x16xf32>
    %98 = vector.shape_cast %95 : vector<16x16xf32> to vector<1x1x16x16xf32>
    tpu.vector_store %arg3[%c0_42, %c1_43, %c0_44, %c0_45], %98 {strides = array<i32>} : memref<1x8x16x16xf32, #tpu.memory_space<vmem>>, vector<1x1x16x16xf32>,
    %c18 = arith.constant 18 : index
    %99 = memref.load %arg2[%c18] : memref<72xf32, #tpu.memory_space<smem>>
    %100 = vector.broadcast %99 : f32 to vector<16x16xf32>
    %101 = arith.mulf %14, %100 : vector<16x16xf32>
    %c19 = arith.constant 19 : index
    %102 = memref.load %arg2[%c19] : memref<72xf32, #tpu.memory_space<smem>>
    %103 = vector.broadcast %102 : f32 to vector<16x16xf32>
    %104 = arith.mulf %15, %103 : vector<16x16xf32>
    %105 = arith.addf %101, %104 : vector<16x16xf32>
    %c20 = arith.constant 20 : index
    %106 = memref.load %arg2[%c20] : memref<72xf32, #tpu.memory_space<smem>>
    %107 = vector.broadcast %106 : f32 to vector<16x16xf32>
    %108 = arith.mulf %16, %107 : vector<16x16xf32>
    %109 = arith.addf %105, %108 : vector<16x16xf32>
    %c21 = arith.constant 21 : index
    %110 = memref.load %arg2[%c21] : memref<72xf32, #tpu.memory_space<smem>>
    %111 = vector.broadcast %110 : f32 to vector<16x16xf32>
    %112 = arith.mulf %17, %111 : vector<16x16xf32>
    %113 = arith.addf %109, %112 : vector<16x16xf32>
    %c22 = arith.constant 22 : index
    %114 = memref.load %arg2[%c22] : memref<72xf32, #tpu.memory_space<smem>>
    %115 = vector.broadcast %114 : f32 to vector<16x16xf32>
    %116 = arith.mulf %18, %115 : vector<16x16xf32>
    %117 = arith.addf %113, %116 : vector<16x16xf32>
    %c23 = arith.constant 23 : index
    %118 = memref.load %arg2[%c23] : memref<72xf32, #tpu.memory_space<smem>>
    %119 = vector.broadcast %118 : f32 to vector<16x16xf32>
    %120 = arith.mulf %19, %119 : vector<16x16xf32>
    %121 = arith.addf %117, %120 : vector<16x16xf32>
    %c24 = arith.constant 24 : index
    %122 = memref.load %arg2[%c24] : memref<72xf32, #tpu.memory_space<smem>>
    %123 = vector.broadcast %122 : f32 to vector<16x16xf32>
    %124 = arith.mulf %20, %123 : vector<16x16xf32>
    %125 = arith.addf %121, %124 : vector<16x16xf32>
    %c25 = arith.constant 25 : index
    %126 = memref.load %arg2[%c25] : memref<72xf32, #tpu.memory_space<smem>>
    %127 = vector.broadcast %126 : f32 to vector<16x16xf32>
    %128 = arith.mulf %21, %127 : vector<16x16xf32>
    %129 = arith.addf %125, %128 : vector<16x16xf32>
    %c26 = arith.constant 26 : index
    %130 = memref.load %arg2[%c26] : memref<72xf32, #tpu.memory_space<smem>>
    %131 = vector.broadcast %130 : f32 to vector<16x16xf32>
    %132 = arith.mulf %22, %131 : vector<16x16xf32>
    %133 = arith.addf %129, %132 : vector<16x16xf32>
    %c0_46 = arith.constant 0 : index
    %c2_47 = arith.constant 2 : index
    %c0_48 = arith.constant 0 : index
    %c0_49 = arith.constant 0 : index
    %134 = vector.load %arg3[%c0_46, %c2_47, %c0_48, %c0_49] : memref<1x8x16x16xf32, #tpu.memory_space<vmem>>, vector<1x1x16x16xf32>
    %135 = vector.shape_cast %134 : vector<1x1x16x16xf32> to vector<16x16xf32>
    %136 = vector.shape_cast %133 : vector<16x16xf32> to vector<1x1x16x16xf32>
    tpu.vector_store %arg3[%c0_46, %c2_47, %c0_48, %c0_49], %136 {strides = array<i32>} : memref<1x8x16x16xf32, #tpu.memory_space<vmem>>, vector<1x1x16x16xf32>,
    %c27 = arith.constant 27 : index
    %137 = memref.load %arg2[%c27] : memref<72xf32, #tpu.memory_space<smem>>
    %138 = vector.broadcast %137 : f32 to vector<16x16xf32>
    %139 = arith.mulf %14, %138 : vector<16x16xf32>
    %c28 = arith.constant 28 : index
    %140 = memref.load %arg2[%c28] : memref<72xf32, #tpu.memory_space<smem>>
    %141 = vector.broadcast %140 : f32 to vector<16x16xf32>
    %142 = arith.mulf %15, %141 : vector<16x16xf32>
    %143 = arith.addf %139, %142 : vector<16x16xf32>
    %c29 = arith.constant 29 : index
    %144 = memref.load %arg2[%c29] : memref<72xf32, #tpu.memory_space<smem>>
    %145 = vector.broadcast %144 : f32 to vector<16x16xf32>
    %146 = arith.mulf %16, %145 : vector<16x16xf32>
    %147 = arith.addf %143, %146 : vector<16x16xf32>
    %c30 = arith.constant 30 : index
    %148 = memref.load %arg2[%c30] : memref<72xf32, #tpu.memory_space<smem>>
    %149 = vector.broadcast %148 : f32 to vector<16x16xf32>
    %150 = arith.mulf %17, %149 : vector<16x16xf32>
    %151 = arith.addf %147, %150 : vector<16x16xf32>
    %c31 = arith.constant 31 : index
    %152 = memref.load %arg2[%c31] : memref<72xf32, #tpu.memory_space<smem>>
    %153 = vector.broadcast %152 : f32 to vector<16x16xf32>
    %154 = arith.mulf %18, %153 : vector<16x16xf32>
    %155 = arith.addf %151, %154 : vector<16x16xf32>
    %c32 = arith.constant 32 : index
    %156 = memref.load %arg2[%c32] : memref<72xf32, #tpu.memory_space<smem>>
    %157 = vector.broadcast %156 : f32 to vector<16x16xf32>
    %158 = arith.mulf %19, %157 : vector<16x16xf32>
    %159 = arith.addf %155, %158 : vector<16x16xf32>
    %c33 = arith.constant 33 : index
    %160 = memref.load %arg2[%c33] : memref<72xf32, #tpu.memory_space<smem>>
    %161 = vector.broadcast %160 : f32 to vector<16x16xf32>
    %162 = arith.mulf %20, %161 : vector<16x16xf32>
    %163 = arith.addf %159, %162 : vector<16x16xf32>
    %c34 = arith.constant 34 : index
    %164 = memref.load %arg2[%c34] : memref<72xf32, #tpu.memory_space<smem>>
    %165 = vector.broadcast %164 : f32 to vector<16x16xf32>
    %166 = arith.mulf %21, %165 : vector<16x16xf32>
    %167 = arith.addf %163, %166 : vector<16x16xf32>
    %c35 = arith.constant 35 : index
    %168 = memref.load %arg2[%c35] : memref<72xf32, #tpu.memory_space<smem>>
    %169 = vector.broadcast %168 : f32 to vector<16x16xf32>
    %170 = arith.mulf %22, %169 : vector<16x16xf32>
    %171 = arith.addf %167, %170 : vector<16x16xf32>
    %c0_50 = arith.constant 0 : index
    %c3_51 = arith.constant 3 : index
    %c0_52 = arith.constant 0 : index
    %c0_53 = arith.constant 0 : index
    %172 = vector.load %arg3[%c0_50, %c3_51, %c0_52, %c0_53] : memref<1x8x16x16xf32, #tpu.memory_space<vmem>>, vector<1x1x16x16xf32>
    %173 = vector.shape_cast %172 : vector<1x1x16x16xf32> to vector<16x16xf32>
    %174 = vector.shape_cast %171 : vector<16x16xf32> to vector<1x1x16x16xf32>
    tpu.vector_store %arg3[%c0_50, %c3_51, %c0_52, %c0_53], %174 {strides = array<i32>} : memref<1x8x16x16xf32, #tpu.memory_space<vmem>>, vector<1x1x16x16xf32>,
    %c36 = arith.constant 36 : index
    %175 = memref.load %arg2[%c36] : memref<72xf32, #tpu.memory_space<smem>>
    %176 = vector.broadcast %175 : f32 to vector<16x16xf32>
    %177 = arith.mulf %14, %176 : vector<16x16xf32>
    %c37 = arith.constant 37 : index
    %178 = memref.load %arg2[%c37] : memref<72xf32, #tpu.memory_space<smem>>
    %179 = vector.broadcast %178 : f32 to vector<16x16xf32>
    %180 = arith.mulf %15, %179 : vector<16x16xf32>
    %181 = arith.addf %177, %180 : vector<16x16xf32>
    %c38 = arith.constant 38 : index
    %182 = memref.load %arg2[%c38] : memref<72xf32, #tpu.memory_space<smem>>
    %183 = vector.broadcast %182 : f32 to vector<16x16xf32>
    %184 = arith.mulf %16, %183 : vector<16x16xf32>
    %185 = arith.addf %181, %184 : vector<16x16xf32>
    %c39 = arith.constant 39 : index
    %186 = memref.load %arg2[%c39] : memref<72xf32, #tpu.memory_space<smem>>
    %187 = vector.broadcast %186 : f32 to vector<16x16xf32>
    %188 = arith.mulf %17, %187 : vector<16x16xf32>
    %189 = arith.addf %185, %188 : vector<16x16xf32>
    %c40 = arith.constant 40 : index
    %190 = memref.load %arg2[%c40] : memref<72xf32, #tpu.memory_space<smem>>
    %191 = vector.broadcast %190 : f32 to vector<16x16xf32>
    %192 = arith.mulf %18, %191 : vector<16x16xf32>
    %193 = arith.addf %189, %192 : vector<16x16xf32>
    %c41 = arith.constant 41 : index
    %194 = memref.load %arg2[%c41] : memref<72xf32, #tpu.memory_space<smem>>
    %195 = vector.broadcast %194 : f32 to vector<16x16xf32>
    %196 = arith.mulf %19, %195 : vector<16x16xf32>
    %197 = arith.addf %193, %196 : vector<16x16xf32>
    %c42 = arith.constant 42 : index
    %198 = memref.load %arg2[%c42] : memref<72xf32, #tpu.memory_space<smem>>
    %199 = vector.broadcast %198 : f32 to vector<16x16xf32>
    %200 = arith.mulf %20, %199 : vector<16x16xf32>
    %201 = arith.addf %197, %200 : vector<16x16xf32>
    %c43 = arith.constant 43 : index
    %202 = memref.load %arg2[%c43] : memref<72xf32, #tpu.memory_space<smem>>
    %203 = vector.broadcast %202 : f32 to vector<16x16xf32>
    %204 = arith.mulf %21, %203 : vector<16x16xf32>
    %205 = arith.addf %201, %204 : vector<16x16xf32>
    %c44 = arith.constant 44 : index
    %206 = memref.load %arg2[%c44] : memref<72xf32, #tpu.memory_space<smem>>
    %207 = vector.broadcast %206 : f32 to vector<16x16xf32>
    %208 = arith.mulf %22, %207 : vector<16x16xf32>
    %209 = arith.addf %205, %208 : vector<16x16xf32>
    %c0_54 = arith.constant 0 : index
    %c4_55 = arith.constant 4 : index
    %c0_56 = arith.constant 0 : index
    %c0_57 = arith.constant 0 : index
    %210 = vector.load %arg3[%c0_54, %c4_55, %c0_56, %c0_57] : memref<1x8x16x16xf32, #tpu.memory_space<vmem>>, vector<1x1x16x16xf32>
    %211 = vector.shape_cast %210 : vector<1x1x16x16xf32> to vector<16x16xf32>
    %212 = vector.shape_cast %209 : vector<16x16xf32> to vector<1x1x16x16xf32>
    tpu.vector_store %arg3[%c0_54, %c4_55, %c0_56, %c0_57], %212 {strides = array<i32>} : memref<1x8x16x16xf32, #tpu.memory_space<vmem>>, vector<1x1x16x16xf32>,
    %c45 = arith.constant 45 : index
    %213 = memref.load %arg2[%c45] : memref<72xf32, #tpu.memory_space<smem>>
    %214 = vector.broadcast %213 : f32 to vector<16x16xf32>
    %215 = arith.mulf %14, %214 : vector<16x16xf32>
    %c46 = arith.constant 46 : index
    %216 = memref.load %arg2[%c46] : memref<72xf32, #tpu.memory_space<smem>>
    %217 = vector.broadcast %216 : f32 to vector<16x16xf32>
    %218 = arith.mulf %15, %217 : vector<16x16xf32>
    %219 = arith.addf %215, %218 : vector<16x16xf32>
    %c47 = arith.constant 47 : index
    %220 = memref.load %arg2[%c47] : memref<72xf32, #tpu.memory_space<smem>>
    %221 = vector.broadcast %220 : f32 to vector<16x16xf32>
    %222 = arith.mulf %16, %221 : vector<16x16xf32>
    %223 = arith.addf %219, %222 : vector<16x16xf32>
    %c48 = arith.constant 48 : index
    %224 = memref.load %arg2[%c48] : memref<72xf32, #tpu.memory_space<smem>>
    %225 = vector.broadcast %224 : f32 to vector<16x16xf32>
    %226 = arith.mulf %17, %225 : vector<16x16xf32>
    %227 = arith.addf %223, %226 : vector<16x16xf32>
    %c49 = arith.constant 49 : index
    %228 = memref.load %arg2[%c49] : memref<72xf32, #tpu.memory_space<smem>>
    %229 = vector.broadcast %228 : f32 to vector<16x16xf32>
    %230 = arith.mulf %18, %229 : vector<16x16xf32>
    %231 = arith.addf %227, %230 : vector<16x16xf32>
    %c50 = arith.constant 50 : index
    %232 = memref.load %arg2[%c50] : memref<72xf32, #tpu.memory_space<smem>>
    %233 = vector.broadcast %232 : f32 to vector<16x16xf32>
    %234 = arith.mulf %19, %233 : vector<16x16xf32>
    %235 = arith.addf %231, %234 : vector<16x16xf32>
    %c51 = arith.constant 51 : index
    %236 = memref.load %arg2[%c51] : memref<72xf32, #tpu.memory_space<smem>>
    %237 = vector.broadcast %236 : f32 to vector<16x16xf32>
    %238 = arith.mulf %20, %237 : vector<16x16xf32>
    %239 = arith.addf %235, %238 : vector<16x16xf32>
    %c52 = arith.constant 52 : index
    %240 = memref.load %arg2[%c52] : memref<72xf32, #tpu.memory_space<smem>>
    %241 = vector.broadcast %240 : f32 to vector<16x16xf32>
    %242 = arith.mulf %21, %241 : vector<16x16xf32>
    %243 = arith.addf %239, %242 : vector<16x16xf32>
    %c53 = arith.constant 53 : index
    %244 = memref.load %arg2[%c53] : memref<72xf32, #tpu.memory_space<smem>>
    %245 = vector.broadcast %244 : f32 to vector<16x16xf32>
    %246 = arith.mulf %22, %245 : vector<16x16xf32>
    %247 = arith.addf %243, %246 : vector<16x16xf32>
    %c0_58 = arith.constant 0 : index
    %c5_59 = arith.constant 5 : index
    %c0_60 = arith.constant 0 : index
    %c0_61 = arith.constant 0 : index
    %248 = vector.load %arg3[%c0_58, %c5_59, %c0_60, %c0_61] : memref<1x8x16x16xf32, #tpu.memory_space<vmem>>, vector<1x1x16x16xf32>
    %249 = vector.shape_cast %248 : vector<1x1x16x16xf32> to vector<16x16xf32>
    %250 = vector.shape_cast %247 : vector<16x16xf32> to vector<1x1x16x16xf32>
    tpu.vector_store %arg3[%c0_58, %c5_59, %c0_60, %c0_61], %250 {strides = array<i32>} : memref<1x8x16x16xf32, #tpu.memory_space<vmem>>, vector<1x1x16x16xf32>,
    %c54 = arith.constant 54 : index
    %251 = memref.load %arg2[%c54] : memref<72xf32, #tpu.memory_space<smem>>
    %252 = vector.broadcast %251 : f32 to vector<16x16xf32>
    %253 = arith.mulf %14, %252 : vector<16x16xf32>
    %c55 = arith.constant 55 : index
    %254 = memref.load %arg2[%c55] : memref<72xf32, #tpu.memory_space<smem>>
    %255 = vector.broadcast %254 : f32 to vector<16x16xf32>
    %256 = arith.mulf %15, %255 : vector<16x16xf32>
    %257 = arith.addf %253, %256 : vector<16x16xf32>
    %c56 = arith.constant 56 : index
    %258 = memref.load %arg2[%c56] : memref<72xf32, #tpu.memory_space<smem>>
    %259 = vector.broadcast %258 : f32 to vector<16x16xf32>
    %260 = arith.mulf %16, %259 : vector<16x16xf32>
    %261 = arith.addf %257, %260 : vector<16x16xf32>
    %c57 = arith.constant 57 : index
    %262 = memref.load %arg2[%c57] : memref<72xf32, #tpu.memory_space<smem>>
    %263 = vector.broadcast %262 : f32 to vector<16x16xf32>
    %264 = arith.mulf %17, %263 : vector<16x16xf32>
    %265 = arith.addf %261, %264 : vector<16x16xf32>
    %c58 = arith.constant 58 : index
    %266 = memref.load %arg2[%c58] : memref<72xf32, #tpu.memory_space<smem>>
    %267 = vector.broadcast %266 : f32 to vector<16x16xf32>
    %268 = arith.mulf %18, %267 : vector<16x16xf32>
    %269 = arith.addf %265, %268 : vector<16x16xf32>
    %c59 = arith.constant 59 : index
    %270 = memref.load %arg2[%c59] : memref<72xf32, #tpu.memory_space<smem>>
    %271 = vector.broadcast %270 : f32 to vector<16x16xf32>
    %272 = arith.mulf %19, %271 : vector<16x16xf32>
    %273 = arith.addf %269, %272 : vector<16x16xf32>
    %c60 = arith.constant 60 : index
    %274 = memref.load %arg2[%c60] : memref<72xf32, #tpu.memory_space<smem>>
    %275 = vector.broadcast %274 : f32 to vector<16x16xf32>
    %276 = arith.mulf %20, %275 : vector<16x16xf32>
    %277 = arith.addf %273, %276 : vector<16x16xf32>
    %c61 = arith.constant 61 : index
    %278 = memref.load %arg2[%c61] : memref<72xf32, #tpu.memory_space<smem>>
    %279 = vector.broadcast %278 : f32 to vector<16x16xf32>
    %280 = arith.mulf %21, %279 : vector<16x16xf32>
    %281 = arith.addf %277, %280 : vector<16x16xf32>
    %c62 = arith.constant 62 : index
    %282 = memref.load %arg2[%c62] : memref<72xf32, #tpu.memory_space<smem>>
    %283 = vector.broadcast %282 : f32 to vector<16x16xf32>
    %284 = arith.mulf %22, %283 : vector<16x16xf32>
    %285 = arith.addf %281, %284 : vector<16x16xf32>
    %c0_62 = arith.constant 0 : index
    %c6_63 = arith.constant 6 : index
    %c0_64 = arith.constant 0 : index
    %c0_65 = arith.constant 0 : index
    %286 = vector.load %arg3[%c0_62, %c6_63, %c0_64, %c0_65] : memref<1x8x16x16xf32, #tpu.memory_space<vmem>>, vector<1x1x16x16xf32>
    %287 = vector.shape_cast %286 : vector<1x1x16x16xf32> to vector<16x16xf32>
    %288 = vector.shape_cast %285 : vector<16x16xf32> to vector<1x1x16x16xf32>
    tpu.vector_store %arg3[%c0_62, %c6_63, %c0_64, %c0_65], %288 {strides = array<i32>} : memref<1x8x16x16xf32, #tpu.memory_space<vmem>>, vector<1x1x16x16xf32>,
    %c63 = arith.constant 63 : index
    %289 = memref.load %arg2[%c63] : memref<72xf32, #tpu.memory_space<smem>>
    %290 = vector.broadcast %289 : f32 to vector<16x16xf32>
    %291 = arith.mulf %14, %290 : vector<16x16xf32>
    %c64 = arith.constant 64 : index
    %292 = memref.load %arg2[%c64] : memref<72xf32, #tpu.memory_space<smem>>
    %293 = vector.broadcast %292 : f32 to vector<16x16xf32>
    %294 = arith.mulf %15, %293 : vector<16x16xf32>
    %295 = arith.addf %291, %294 : vector<16x16xf32>
    %c65 = arith.constant 65 : index
    %296 = memref.load %arg2[%c65] : memref<72xf32, #tpu.memory_space<smem>>
    %297 = vector.broadcast %296 : f32 to vector<16x16xf32>
    %298 = arith.mulf %16, %297 : vector<16x16xf32>
    %299 = arith.addf %295, %298 : vector<16x16xf32>
    %c66 = arith.constant 66 : index
    %300 = memref.load %arg2[%c66] : memref<72xf32, #tpu.memory_space<smem>>
    %301 = vector.broadcast %300 : f32 to vector<16x16xf32>
    %302 = arith.mulf %17, %301 : vector<16x16xf32>
    %303 = arith.addf %299, %302 : vector<16x16xf32>
    %c67 = arith.constant 67 : index
    %304 = memref.load %arg2[%c67] : memref<72xf32, #tpu.memory_space<smem>>
    %305 = vector.broadcast %304 : f32 to vector<16x16xf32>
    %306 = arith.mulf %18, %305 : vector<16x16xf32>
    %307 = arith.addf %303, %306 : vector<16x16xf32>
    %c68 = arith.constant 68 : index
    %308 = memref.load %arg2[%c68] : memref<72xf32, #tpu.memory_space<smem>>
    %309 = vector.broadcast %308 : f32 to vector<16x16xf32>
    %310 = arith.mulf %19, %309 : vector<16x16xf32>
    %311 = arith.addf %307, %310 : vector<16x16xf32>
    %c69 = arith.constant 69 : index
    %312 = memref.load %arg2[%c69] : memref<72xf32, #tpu.memory_space<smem>>
    %313 = vector.broadcast %312 : f32 to vector<16x16xf32>
    %314 = arith.mulf %20, %313 : vector<16x16xf32>
    %315 = arith.addf %311, %314 : vector<16x16xf32>
    %c70 = arith.constant 70 : index
    %316 = memref.load %arg2[%c70] : memref<72xf32, #tpu.memory_space<smem>>
    %317 = vector.broadcast %316 : f32 to vector<16x16xf32>
    %318 = arith.mulf %21, %317 : vector<16x16xf32>
    %319 = arith.addf %315, %318 : vector<16x16xf32>
    %c71 = arith.constant 71 : index
    %320 = memref.load %arg2[%c71] : memref<72xf32, #tpu.memory_space<smem>>
    %321 = vector.broadcast %320 : f32 to vector<16x16xf32>
    %322 = arith.mulf %22, %321 : vector<16x16xf32>
    %323 = arith.addf %319, %322 : vector<16x16xf32>
    %c0_66 = arith.constant 0 : index
    %c7_67 = arith.constant 7 : index
    %c0_68 = arith.constant 0 : index
    %c0_69 = arith.constant 0 : index
    %324 = vector.load %arg3[%c0_66, %c7_67, %c0_68, %c0_69] : memref<1x8x16x16xf32, #tpu.memory_space<vmem>>, vector<1x1x16x16xf32>
    %325 = vector.shape_cast %324 : vector<1x1x16x16xf32> to vector<16x16xf32>
    %326 = vector.shape_cast %323 : vector<16x16xf32> to vector<1x1x16x16xf32>
    tpu.vector_store %arg3[%c0_66, %c7_67, %c0_68, %c0_69], %326 {strides = array<i32>} : memref<1x8x16x16xf32, #tpu.memory_space<vmem>>, vector<1x1x16x16xf32>,
    return
  }
  func.func @transform_0(%arg0: i32) -> (i32, i32, i32, i32) {
    %c0_i32 = arith.constant 0 : i32
    %c0_i32_0 = arith.constant 0 : i32
    %c0_i32_1 = arith.constant 0 : i32
    %c0_i32_2 = arith.constant 0 : i32
    return %arg0, %c0_i32, %c0_i32_0, %c0_i32_1 : i32, i32, i32, i32
  }
  func.func @transform_1(%arg0: i32) -> i32 {
    %c0_i32 = arith.constant 0 : i32
    %c0_i32_0 = arith.constant 0 : i32
    return %c0_i32 : i32
  }
  func.func @transform_2(%arg0: i32) -> (i32, i32, i32, i32) {
    %c0_i32 = arith.constant 0 : i32
    %c0_i32_0 = arith.constant 0 : i32
    %c0_i32_1 = arith.constant 0 : i32
    %c0_i32_2 = arith.constant 0 : i32
    return %arg0, %c0_i32, %c0_i32_0, %c0_i32_1 : i32, i32, i32, i32
  }
}

</mosaic_0001>

<bundles_post_ra>
// kernel: tpu_custom_call.1
= control target key start
LH: loop header
LB: loop body
LE: loop exit
PB: predicated region body
PF: predicated region fallthrough
CT: control target
= control target key end

     0   :  { %7 = vsyncpa [#allocation4], 0  ;;  %s2048_s0 = inlined_call_operand.hbm [shape: f32[2,4,16,16], index: 0, kind: input, shape index: {}]   ;;  %s2049_s1 = inlined_call_operand.hbm [shape: f32[72], index: 1, kind: input, shape index: {}]   ;;  %s2050_s2 = inlined_call_operand.hbm [shape: f32[2,8,16,16], index: 2, kind: output, shape index: {}]  }
   0x1   :  { %9 = vsyncpa [#allocation4 + $0x1], 0 }
   0x2   :  { %10 = vsyncpa [#allocation6], 0 }
   0x3   :  { %11 = vsyncpa [#allocation5], 0 }
   0x4   :  { %13 = vsyncpa [#allocation5 + $0x1], 0  ;;  %s1463_s9 = smov 0   ;;  %s1465_s10 = smov 0  }
   0x5   :  { %s1467_s11 = smov 0   ;;  %s1469_s12 = smov 0  }
   0x6 LB: > { %s1484_s13 = sadd.s32 4294967295, %s1437_s12   ;;  %s1142_s14 = sadd.s32 4294967294, %s1437_s12   ;;  %s1437_s12 = sphi %s1469_s12, %s2061_s12   ;;  %s1433_s11 = sphi %s1467_s11, %s2060_s11   ;;  %s1429_s10 = sphi %s1465_s10, %s2059_s10   ;;  %s1425_s9 = sphi %s1463_s9, %s2058_s9  }
   0x7   : > { %s1488_s15 = sadd.s32 1, %s1437_s12   ;;  %s26_s16 = sadd.s32 1, %s1433_s11 }
   0x8   : > { %s23_s17 = ssub.s32 %s1437_s12, %s1488_s15  ;;  %p33_p0 = scmp.ne.s32.totalorder %s1433_s11, %s1429_s10 }
   0x9   : > { %p24_p1 = scmp.eq.s32.totalorder %s23_s17, 0  ;;  %p34_p2 = scmp.eq.s32.totalorder %s1437_s12, 0 }
   0xa   : > { %p39_p3 = scmp.ne.s32.totalorder %s1429_s10, %s1425_s9  ;;  %p40_p4 = scmp.eq.s32.totalorder %s1484_s13, 0 }
   0xb   : > { %s1500_s18 = scalar_select %p24_p1, %s1433_s11, %s26_s16  }
   0xc   : > { %p1502_p5 = por %p34_p2, %p33_p0  ;;  %p1508_p6 = por %p40_p4, %p39_p3 }
   0xd   : > { %p84_p7 = scmp.eq.s32.totalorder %s1484_s13, 1  ;;  %p90_p8 = scmp.eq.s32.totalorder %s1142_s14, 1 }
   0xe   : > { %p1143_p9 = scmp.ge.s32.totalorder %s1437_s12, 1  ;;  %p97_p10 = scmp.lt.s32.totalorder %s1437_s12, 3 }
   0xf   : > { %p1515_p11 = por %p84_p7, %p33_p0  ;;  %p1519_p12 = por %p90_p8, %p39_p3 }
  0x10   : > { %p1523_p13 = pnand %p1143_p9, %p97_p10  ;;  %s109_s26 = sshll.u32 %s2049_s1, 4  ;;  %s110_s26 = int_to_ptr.hbm [resolvable:$true] %s109_s26 }
  0x11   : > { %p1272_p2 = scmp.lt.s32.totalorder %s1437_s12, 2  ;;  %s120_s27 = sand.u32 1, %s1433_s11  }
  0x12   : > { %p1259_p1 = pneg %p1523_p13  ;;  %s1146_s29 = sshll.u32 %s120_s27, 6 }
  0x13   : > { %p1539_p3 = pnand %p1272_p2, %p1502_p5  ;;  %s1439_s30 = smov [#allocation7]  }
  0x14   : > { %p1260_p7 = pnand %p1259_p1, %p40_p4  ;;  %s1249_s3 = sshll.u32 %s1437_s12, 6 }
  0x15   : > { %s124_s4 = scalar_lea.vmem [#allocation3], %s1146_s29  ;;  %s129_s8 = scalar_lea.hbm %s2048_s0, %s1249_s3 }
  0x16   : > { %1262 = dma.hbm_to_smem (!%p1260_p7), %s110_s26, 16, %s1439_s30, [#allocation6]  }
  0x17   : > { %s132_s5 = sshll.u32 %s124_s4, 4  ;;  %s130_s14 = sshll.u32 %s129_s8, 4  ;;  %s133_s5 = int_to_ptr.vmem [resolvable:$true] %s132_s5  ;;  %s131_s14 = int_to_ptr.hbm [resolvable:$true] %s130_s14 }
  0x18   : > { %s121_s16 = scalar_lea.sflag [#allocation4], %s120_s27  ;;  %s1337_s17 = sshra.s32 %s131_s14, 4  ;;  %s1338_s17 = int_to_ptr.hbm [resolvable:$true] %s1337_s17 }
  0x19   : > { %s1339_s19 = scalar_lea.hbm %s1338_s17, 64  ;;  %p1341_p8 = pneg %p1539_p3 }
  0x1a   : > { %p1340_p5 = scmp.ne.s32.totalorder %s1338_s17, %s1339_s19  ;;  %s1344_s26 = scalar_lea.hbm %s2048_s0, 128 }
  0x1b   : > { %p1345_p1 = scmp.lt.s32.totalorder %s1338_s17, %s2048_s0  ;;  %p1346_p2 = scmp.lt.s32.totalorder %s1344_s26, %s1339_s19 }
  0x1c   : > { %p1342_p9 = pnand %p1341_p8, %p1340_p5 }
  0x1d   : > { %p1347_p7 = por %p1346_p2, %p1345_p1 }
  0x1e   : > { %p1343_p10 = pneg %p1342_p9 }
  0x20   : > { %p1348_p0 = pnand %p1347_p7, %p1343_p10 }
  0x22   : > { %1351 = shalt.err (!%p1348_p0)
}
  0x23   : > { %s1440_s27 = smov 128   ;;  %s1441_s3 = smov 8  }
  0x24   : > { %1266 = dma.hbm_to_vmem [thread:$0]  (!%p1539_p3), %s131_s14, 1024, %s133_s5, %s121_s16, %s1440_s27, %s1440_s27, %s1441_s3  }
  0x25   : > { %144 = sbr.rel (%p1523_p13) target bundleno = 556 (0x22c), region = 28  ;;  %s1560_s4 = sand.u32 (!%p1523_p13), 1, %s1429_s10  }
  0x26   : > { %s1150_s6 = sshll.u32 (!%p1523_p13), %s1560_s4, 6  ;;  %s147_s7 = scalar_lea.sflag (!%p1523_p13), [#allocation4], %s1560_s4 }
  0x27   : > { %s150_s8 = scalar_lea.vmem (!%p1523_p13), [#allocation3], %s1150_s6 }
  0x2a   : > { %1412 = dma.done.wait (%p1508_p6), %s147_s7, 1024  }
  0x2b   : > { %1414 = vsyncadd (%p1508_p6), %s147_s7, 4294966272 }
  0x2c   : > { %1416 = dma.done.wait (%p40_p4), [#allocation6], 16  }
  0x2d   : > { %1418 = vsyncadd (%p40_p4), [#allocation6], 4294967280 }
  0x2e   : > { %161 = sfence }
  0x2f   : > { %v178_v0 = vld [vmem:[%s150_s8] sm:$0xff]  ;;  %v1153_v1 = vld [vmem:[%s150_s8 + $0x10] sm:$0xff]  ;;  %vm195_vm0 = vcmask 146432   ;;  %v179_v4 = vld [vmem:[%s150_s8 + $0x8] sm:$0xff]  ;;  %v1442_v6 = vmov 0.0   ;;  %s1443_s20 = smov 1  }
  0x30   : > { %v1155_v2 = vld [vmem:[%s150_s8 + $0x20] sm:$0xff]  ;;  %v183_v3 = vadd.f32 %v1153_v1, %v178_v0  ;;  %v1154_v5 = vld [vmem:[%s150_s8 + $0x18] sm:$0xff]  ;;  %196 = vst.msk [vmem:[#allocation2] sm:$0xff] %vm195_vm0, %v1442_v6  ;;  %v1157_v7 = vld [vmem:[%s150_s8 + $0x30] sm:$0xff]  ;;  %vm198_vm1 = vcmask 140288   ;;  %s1572_s23 = sld [smem:[#allocation7 + $0x4]] }
  0x31   : > { %197 = vst.msk [vmem:[#allocation2 + $0x8] sm:$0xff] %vm195_vm0, %v1442_v6  ;;  %v184_v9 = vadd.f32 %v1154_v5, %v179_v4  ;;  %v1156_v10 = vld [vmem:[%s150_s8 + $0x28] sm:$0xff]  ;;  %v1158_v13 = vld [vmem:[%s150_s8 + $0x38] sm:$0xff]  ;;  %s1160_s28 = sld [smem:[#allocation7 + $0x2]]  ;;  %vm208_vm2 = vcmask 138248   ;;  %s1444_s16 = smov 127  }
  0x32   : > { %v188_v8 = vadd.f32 %v1155_v2, %v183_v3  ;;  %199 = vst.msk [vmem:[#allocation2 + $0x10] sm:$0x3] %vm198_vm1, %v1442_v6  ;;  %s1159_s5 = sld [smem:[#allocation7 + $0x1]]  ;;  %s1445_s17 = smov 126   ;;  %vm317_vm3 = vcmask 130048  }
  0x33   : > { %v189_v12 = vadd.f32 %v1156_v10, %v184_v9  ;;  %s1163_s14 = sld [smem:[#allocation7 + $0x5]] }
  0x34   : > { %v193_v11 = vadd.f32 %v1157_v7, %v188_v8  ;;  %s1585_s19 = sld [smem:[#allocation7 + $0x8]] }
  0x35   : > { %v194_v14 = vadd.f32 %v1158_v13, %v189_v12  ;;  %s1165_s24 = sld [smem:[#allocation7 + $0x7]] }
  0x36   : > { %202 = vrot.lane.b32.xlu0 %v193_v11, %s1443_s20  ;;  %v256_v16 = vstv %s1572_s23  ;;  %s1168_s25 = sld [smem:[#allocation7 + $0xa]] }
  0x37   : > { %v236_v17 = vstv %s1160_s28  ;;  %s1608_s26 = sld [smem:[#allocation7 + $0xd]] }
  0x38   : > { %v222_v18 = vstv %s1159_s5  ;;  %s1169_s29 = sld [smem:[#allocation7 + $0xb]] }
  0x39   : > { %v270_v27 = vstv %s1163_s14  ;;  %s1172_s30 = sld [smem:[#allocation7 + $0xe]] }
  0x3a   : > { %v304_v32 = vstv %s1585_s19  ;;  %s1623_s27 = sld [smem:[#allocation7 + $0x11]] }
  0x3b   : > { %v290_v37 = vstv %s1165_s24  ;;  %s1174_s3 = sld [smem:[#allocation7 + $0x10]] }
  0x3c   : > { %v325_v38 = vstv %s1168_s25  ;;  %s1179_s6 = sld [smem:[#allocation7 + $0x13]] }
  0x3d   : > { %v359_v42 = vstv %s1608_s26  ;;  %s1638_s7 = sld [smem:[#allocation7 + $0x16]] }
  0x3e   : > { %204 = vrot.lane.b32.xlu0 %v194_v14, %s1443_s20  ;;  %v339_v46 = vstv %s1169_s29  ;;  %s1180_s8 = sld [smem:[#allocation7 + $0x14]] }
  0x3f   : > { %v373_v47 = vstv %s1172_s30  ;;  %s1183_s20 = sld [smem:[#allocation7 + $0x17]] }
  0x40   : > { %v407_v51 = vstv %s1623_s27  ;;  %s1653_s23 = sld [smem:[#allocation7 + $0x1a]] }
  0x41   : > { %v393_v55 = vstv %s1174_s3  ;;  %s1185_s28 = sld [smem:[#allocation7 + $0x19]] }
  0x42   : > { %v428_v56 = vstv %s1179_s6  ;;  %s1190_s5 = sld [smem:[#allocation7 + $0x1c]] }
  0x43   : > { %v462_v60 = vstv %s1638_s7  ;;  %s1668_s14 = sld [smem:[#allocation7 + $0x1f]] }
  0x44   : > { %v442_v0 = vstv %s1180_s8  ;;  %s1191_s19 = sld [smem:[#allocation7 + $0x1d]] }
  0x45   : > { %v476_v1 = vstv %s1183_s20  ;;  %s1194_s24 = sld [smem:[#allocation7 + $0x20]] }
  0x46   : > { %v510_v5 = vstv %s1653_s23  ;;  %s1683_s25 = sld [smem:[#allocation7 + $0x23]] }
  0x47   : > { %v496_v9 = vstv %s1185_s28  ;;  %s1688_s26 = sld [smem:[#allocation7]] }
  0x48   : > { %v531_v10 = vstv %s1190_s5  ;;  %s1693_s29 = sld [smem:[#allocation7 + $0x3]]  ;;  %s1152_s5 = sshll.u32 %s1560_s4, 7 }
  0x49   : > { %s1196_s30 = sld [smem:[#allocation7 + $0x22]] }
  0x4a   : > { %s1696_s27 = sld [smem:[#allocation7 + $0x25]] }
  0x4b   : > { %s1705_s3 = sld [smem:[#allocation7 + $0x6]] }
  0x4c   : > { %s1710_s6 = sld [smem:[#allocation7 + $0x28]] }
  0x4d   : > { %s1202_s7 = sld [smem:[#allocation7 + $0x26]] }
  0x4e   : > { %s1728_s8 = sld [smem:[#allocation7 + $0x29]] }
  0x4f   : > { %s1733_s20 = sld [smem:[#allocation7 + $0x9]] }
  0x50   : > { %s1738_s23 = sld [smem:[#allocation7 + $0x2c]] }
  0x51   : > { %s1740_s28 = sld [smem:[#allocation7 + $0xc]] }
  0xa8   : > { %v203_v15 = vpop.permute.xlu0 %202 }
  0xa9   : > { %209 = vst.msk [vmem:[#allocation2 + $0x1] sm:$0xff] %vm208_vm2, %v203_v15  ;;  %v565_v15 = vstv %s1668_s14  ;;  %s1207_s14 = sld [smem:[#allocation7 + $0x2b]] }
  0xb0   : > { %v1575_v19 = vld [vmem:[#allocation2] sm:$0xff]  ;;  %v205_v21 = vpop.permute.xlu0 %204 }
  0xb1   : > { %v1577_v20 = vld [vmem:[#allocation2 + $0x1] sm:$0xff]  ;;  %210 = vst.msk [vmem:[#allocation2 + $0x9] sm:$0xff] %vm208_vm2, %v205_v21  ;;  %v237_v23 = vmul.f32 %v236_v17, %v1575_v19  ;;  %v223_v24 = vmul.f32 %v222_v18, %v1575_v19  ;;  %v326_v44 = vmul.f32 %v325_v38, %v1575_v19  ;;  %v340_v50 = vmul.f32 %v339_v46, %v1575_v19 }
  0xb2   : > { %v257_v22 = vmul.f32 %v256_v16, %v1577_v20  ;;  %v271_v34 = vmul.f32 %v270_v27, %v1577_v20  ;;  %v360_v43 = vmul.f32 %v359_v42, %v1577_v20  ;;  %v374_v53 = vmul.f32 %v373_v47, %v1577_v20 }
  0xb3   : > { %241 = vrot.lane.b32.xlu2 %v237_v23, %s1445_s17  ;;  %227 = vrot.lane.b32.xlu1 %v223_v24, %s1444_s16  ;;  %v463_v61 = vmul.f32 %v462_v60, %v1577_v20  ;;  %v429_v62 = vmul.f32 %v428_v56, %v1575_v19  ;;  %v443_v4 = vmul.f32 %v442_v0, %v1575_v19  ;;  %v579_v23 = vstv %s1194_s24  ;;  %s1761_s24 = scalar_lea.vmem [#allocation8], %s1152_s5  ;;  %s1851_s5 = sld [smem:[#allocation7 + $0x40]] }
  0xb4   : > { %261 = vrot.lane.b32.xlu0 %v257_v22, %s1444_s16  ;;  %v477_v7 = vmul.f32 %v476_v1, %v1577_v20  ;;  %v545_v22 = vstv %s1191_s19  ;;  %s1755_s19 = sld [smem:[#allocation7 + $0x2e]] }
  0xb8   : > { %v1587_v25 = vld [vmem:[#allocation2 + $0x8] sm:$0xff] }
  0xb9   : > { %v1589_v26 = vld [vmem:[#allocation2 + $0x9] sm:$0xff]  ;;  %v238_v28 = vmul.f32 %v236_v17, %v1587_v25  ;;  %v224_v29 = vmul.f32 %v222_v18, %v1587_v25  ;;  %v327_v39 = vmul.f32 %v325_v38, %v1587_v25  ;;  %v341_v49 = vmul.f32 %v339_v46, %v1587_v25 }
  0xba   : > { %v272_v30 = vmul.f32 %v270_v27, %v1589_v26  ;;  %v1597_v31 = vld [vmem:[#allocation2 + $0x2] sm:$0xff]  ;;  %v258_v35 = vmul.f32 %v256_v16, %v1589_v26  ;;  %v1606_v36 = vld [vmem:[#allocation2 + $0xa] sm:$0xff]  ;;  %v375_v48 = vmul.f32 %v373_v47, %v1589_v26  ;;  %v361_v54 = vmul.f32 %v359_v42, %v1589_v26 }
  0xbb   : > { %243 = vrot.lane.b32.xlu2 %v238_v28, %s1445_s17  ;;  %229 = vrot.lane.b32.xlu1 %v224_v29, %s1444_s16  ;;  %v305_v33 = vmul.f32 %v304_v32, %v1597_v31  ;;  %v292_v40 = vmul.f32 %v290_v37, %v1606_v36  ;;  %v291_v41 = vmul.f32 %v290_v37, %v1597_v31  ;;  %v599_v42 = vstv %s1196_s30  ;;  %s1790_s30 = sld [smem:[#allocation7 + $0x32]] }
  0xbc   : > { %277 = vrot.lane.b32.xlu0 %v272_v30, %s1445_s17  ;;  %v306_v45 = vmul.f32 %v304_v32, %v1606_v36  ;;  %v408_v52 = vmul.f32 %v407_v51, %v1597_v31  ;;  %v430_v57 = vmul.f32 %v428_v56, %v1587_v25  ;;  %v395_v58 = vmul.f32 %v393_v55, %v1606_v36 }
  0xbd   : > { %v394_v59 = vmul.f32 %v393_v55, %v1597_v31  ;;  %v409_v63 = vmul.f32 %v407_v51, %v1606_v36  ;;  %v478_v2 = vmul.f32 %v476_v1, %v1589_v26  ;;  %v444_v3 = vmul.f32 %v442_v0, %v1587_v25 }
  0xbe   : > { %v511_v6 = vmul.f32 %v510_v5, %v1597_v31  ;;  %v464_v8 = vmul.f32 %v462_v60, %v1589_v26  ;;  %v533_v11 = vmul.f32 %v531_v10, %v1587_v25  ;;  %v498_v12 = vmul.f32 %v496_v9, %v1606_v36 }
  0xbf   : > { %v497_v13 = vmul.f32 %v496_v9, %v1597_v31  ;;  %v566_v16 = vmul.f32 %v565_v15, %v1577_v20  ;;  %v532_v17 = vmul.f32 %v531_v10, %v1575_v19  ;;  %v512_v18 = vmul.f32 %v510_v5, %v1606_v36 }
  0xc0   : > { %v581_v24 = vmul.f32 %v579_v23, %v1589_v26  ;;  %v547_v27 = vmul.f32 %v545_v22, %v1587_v25  ;;  %v546_v28 = vmul.f32 %v545_v22, %v1575_v19  ;;  %v613_v30 = vstv %s1683_s25  ;;  %s1771_s25 = sld [smem:[#allocation7 + $0x31]] }
  0xc1   : > { %v614_v32 = vmul.f32 %v613_v30, %v1597_v31  ;;  %v284_v51 = vstv %s1705_s3  ;;  %v668_v56 = vstv %s1710_s6  ;;  %v682_v9 = vstv %s1728_s8  ;;  %s1802_s3 = sld [smem:[#allocation7 + $0x35]] }
  0xc2   : > { %v285_v60 = vmul.f32 %v284_v51, %v1597_v31  ;;  %s1804_s6 = sld [smem:[#allocation7 + $0x15]] }
  0xc3   : > { %275 = vrot.lane.b32.xlu2 %v271_v34, %s1445_s17  ;;  %263 = vrot.lane.b32.xlu1 %v258_v35, %s1444_s16  ;;  %v567_v34 = vmul.f32 %v565_v15, %v1589_v26  ;;  %v218_v35 = vstv %s1688_s26  ;;  %v321_v15 = vstv %s1733_s20  ;;  %s1779_s26 = sld [smem:[#allocation7 + $0xf]] }
  0xc4   : > { %309 = vrot.lane.b32.xlu0 %v305_v33, %s1445_s17  ;;  %v580_v33 = vmul.f32 %v579_v23, %v1577_v20  ;;  %v219_v37 = vmul.f32 %v218_v35, %v1575_v19  ;;  %s1818_s8 = sld [smem:[#allocation7 + $0x37]] }
  0xc5   : > { %s1832_s20 = sld [smem:[#allocation7 + $0x3a]] }
  0xcb   : > { %297 = vrot.lane.b32.xlu2 %v292_v40, %s1444_s16  ;;  %295 = vrot.lane.b32.xlu1 %v291_v41, %s1444_s16  ;;  %v250_v41 = vstv %s1693_s29  ;;  %s1213_s29 = sld [smem:[#allocation7 + $0x2f]] }
  0xcc   : > { %332 = vrot.lane.b32.xlu0 %v327_v39, %s1444_s16  ;;  %v251_v46 = vmul.f32 %v250_v41, %v1577_v20  ;;  %v252_v0 = vmul.f32 %v250_v41, %v1589_v26 }
  0xd3   : > { %330 = vrot.lane.b32.xlu2 %v326_v44, %s1444_s16  ;;  %311 = vrot.lane.b32.xlu1 %v306_v45, %s1445_s17  ;;  %v634_v44 = vstv %s1696_s27  ;;  %s1796_s27 = sld [smem:[#allocation7 + $0x12]] }
  0xd4   : > { %364 = vrot.lane.b32.xlu0 %v360_v43, %s1444_s16  ;;  %v636_v47 = vmul.f32 %v634_v44, %v1587_v25 }
  0xdb   : > { %346 = vrot.lane.b32.xlu2 %v341_v49, %s1445_s17  ;;  %344 = vrot.lane.b32.xlu1 %v340_v50, %s1445_s17  ;;  %v600_v49 = vmul.f32 %v599_v42, %v1597_v31 }
  0xdc   : > { %380 = vrot.lane.b32.xlu0 %v375_v48, %s1445_s17  ;;  %v601_v48 = vmul.f32 %v599_v42, %v1606_v36 }
  0xe3   : > { %378 = vrot.lane.b32.xlu2 %v374_v53, %s1445_s17  ;;  %366 = vrot.lane.b32.xlu1 %v361_v54, %s1444_s16  ;;  %v220_v54 = vmul.f32 %v218_v35, %v1587_v25  ;;  %v670_v35 = vmul.f32 %v668_v56, %v1589_v26 }
  0xe4   : > { %412 = vrot.lane.b32.xlu0 %v408_v52, %s1445_s17 }
  0xeb   : > { %400 = vrot.lane.b32.xlu2 %v395_v58, %s1444_s16  ;;  %398 = vrot.lane.b32.xlu1 %v394_v59, %s1444_s16 }
  0xec   : > { %435 = vrot.lane.b32.xlu0 %v430_v57, %s1444_s16 }
  0xf3   : > { %433 = vrot.lane.b32.xlu2 %v429_v62, %s1444_s16  ;;  %414 = vrot.lane.b32.xlu1 %v409_v63, %s1445_s17  ;;  %v635_v63 = vmul.f32 %v634_v44, %v1575_v19 }
  0xf4   : > { %467 = vrot.lane.b32.xlu0 %v463_v61, %s1444_s16  ;;  %v669_v61 = vmul.f32 %v668_v56, %v1577_v20 }
  0xfb   : > { %449 = vrot.lane.b32.xlu2 %v444_v3, %s1445_s17  ;;  %447 = vrot.lane.b32.xlu1 %v443_v4, %s1445_s17 }
  0xfc   : > { %483 = vrot.lane.b32.xlu0 %v478_v2, %s1445_s17  ;;  %v615_v2 = vmul.f32 %v613_v30, %v1606_v36 }
 0x103   : > { %481 = vrot.lane.b32.xlu2 %v477_v7, %s1445_s17  ;;  %469 = vrot.lane.b32.xlu1 %v464_v8, %s1444_s16  ;;  %v648_v8 = vstv %s1202_s7  ;;  %s1218_s7 = sld [smem:[#allocation7 + $0x34]] }
 0x104   : > { %515 = vrot.lane.b32.xlu0 %v511_v6, %s1445_s17 }
 0x10b   : > { %503 = vrot.lane.b32.xlu2 %v498_v12, %s1444_s16  ;;  %501 = vrot.lane.b32.xlu1 %v497_v13, %s1444_s16  ;;  %v650_v12 = vmul.f32 %v648_v8, %v1587_v25  ;;  %v286_v13 = vmul.f32 %v284_v51, %v1606_v36 }
 0x10c   : > { %538 = vrot.lane.b32.xlu0 %v533_v11, %s1444_s16  ;;  %v684_v11 = vmul.f32 %v682_v9, %v1589_v26 }
 0x10d   : > { %v242_v14 = vpop.permute.xlu2 %241 }
 0x113   : > { %536 = vrot.lane.b32.xlu2 %v532_v17, %s1444_s16  ;;  %517 = vrot.lane.b32.xlu1 %v512_v18, %s1445_s17  ;;  %v323_v17 = vmul.f32 %v321_v15, %v1587_v25 }
 0x114   : > { %570 = vrot.lane.b32.xlu0 %v566_v16, %s1444_s16 }
 0x115   : > { %v244_v21 = vpop.permute.xlu2 %243 }
 0x11b   : > { %552 = vrot.lane.b32.xlu2 %v547_v27, %s1445_s17  ;;  %550 = vrot.lane.b32.xlu1 %v546_v28, %s1445_s17  ;;  %v353_v28 = vstv %s1740_s28  ;;  %s1224_s28 = sld [smem:[#allocation7 + $0x38]] }
 0x11c   : > { %586 = vrot.lane.b32.xlu0 %v581_v24, %s1445_s17  ;;  %v716_v24 = vstv %s1738_s23  ;;  %v355_v30 = vmul.f32 %v353_v28, %v1589_v26  ;;  %s1840_s23 = sld [smem:[#allocation7 + $0x18]] }
 0x11d   : > { %v276_v29 = vpop.permute.xlu2 %275 }
 0x123   : > { %584 = vrot.lane.b32.xlu2 %v580_v33, %s1445_s17  ;;  %572 = vrot.lane.b32.xlu1 %v567_v34, %s1444_s16  ;;  %v717_v33 = vmul.f32 %v716_v24, %v1597_v31  ;;  %v683_v34 = vmul.f32 %v682_v9, %v1577_v20 }
 0x124   : > { %618 = vrot.lane.b32.xlu0 %v614_v32, %s1445_s17 }
 0x125   : > { %v1708_v38 = vpop.permute.xlu2 %297  ;;  %v228_v40 = vpop.permute.xlu1 %227 }
 0x126   : > { %v262_v39 = vpop.permute.xlu0 %261  ;;  %v233_v43 = vadd.f32 %v228_v40, %v219_v37 }
 0x128   : > { %v247_v45 = vadd.f32 %v242_v14, %v233_v43  ;;  %v649_v14 = vmul.f32 %v648_v8, %v1575_v19  ;;  %v702_v43 = vstv %s1207_s14  ;;  %s1857_s14 = sld [smem:[#allocation7 + $0x1b]] }
 0x12a   : > { %v253_v50 = vadd.f32 %v251_v46, %v247_v45  ;;  %v737_v45 = vstv %s1755_s19  ;;  %s1863_s19 = sld [smem:[#allocation7 + $0x43]] }
 0x12b   : > { %606 = vrot.lane.b32.xlu2 %v601_v48, %s1444_s16  ;;  %604 = vrot.lane.b32.xlu1 %v600_v49, %s1444_s16  ;;  %v739_v46 = vmul.f32 %v737_v45, %v1587_v25  ;;  %v703_v48 = vmul.f32 %v702_v43, %v1597_v31 }
 0x12c   : > { %641 = vrot.lane.b32.xlu0 %v636_v47, %s1444_s16  ;;  %v267_v52 = vadd.f32 %v262_v39, %v253_v50  ;;  %v704_v47 = vmul.f32 %v702_v43, %v1606_v36  ;;  %v840_v43 = vstv %s1818_s8  ;;  %s1925_s8 = sld [smem:[#allocation7 + $0x47]] }
 0x12d   : > { %v1722_v53 = vpop.permute.xlu2 %330  ;;  %v230_v57 = vpop.permute.xlu1 %229 }
 0x12e   : > { %v278_v55 = vpop.permute.xlu0 %277  ;;  %v281_v58 = vadd.f32 %v276_v29, %v267_v52  ;;  %v234_v59 = vadd.f32 %v230_v57, %v220_v54  ;;  %v771_v54 = vstv %s1771_s25  ;;  %s1865_s25 = sld [smem:[#allocation7 + $0x1e]] }
 0x130   : > { %v248_v62 = vadd.f32 %v244_v21, %v234_v59  ;;  %v287_v1 = vadd.f32 %v285_v60, %v281_v58  ;;  %v772_v58 = vmul.f32 %v771_v54, %v1577_v20  ;;  %v738_v59 = vmul.f32 %v737_v45, %v1575_v19 }
 0x131   : > { %v718_v60 = vmul.f32 %v716_v24, %v1606_v36 }
 0x132   : > { %v254_v3 = vadd.f32 %v252_v0, %v248_v62 }
 0x133   : > { %639 = vrot.lane.b32.xlu2 %v635_v63, %s1444_s16  ;;  %620 = vrot.lane.b32.xlu1 %v615_v2, %s1445_s17 }
 0x134   : > { %673 = vrot.lane.b32.xlu0 %v669_v61, %s1444_s16  ;;  %v387_v61 = vstv %s1779_s26  ;;  %s1235_s26 = sld [smem:[#allocation7 + $0x41]] }
 0x135   : > { %v347_v4 = vpop.permute.xlu2 %346  ;;  %v264_v6 = vpop.permute.xlu1 %263  ;;  %v388_v0 = vmul.f32 %v387_v61, %v1597_v31 }
 0x136   : > { %v310_v5 = vpop.permute.xlu0 %309  ;;  %v268_v7 = vadd.f32 %v264_v6, %v254_v3  ;;  %v785_v6 = vstv %s1790_s30  ;;  %s1893_s30 = sld [smem:[#allocation7 + $0x3d]] }
 0x137   : > { %v787_v8 = vmul.f32 %v785_v6, %v1589_v26 }
 0x138   : > { %v282_v10 = vadd.f32 %v278_v55, %v268_v7  ;;  %v354_v55 = vmul.f32 %v353_v28, %v1577_v20 }
 0x13a   : > { %v288_v16 = vadd.f32 %v286_v13, %v282_v10  ;;  %v389_v10 = vmul.f32 %v387_v61, %v1606_v36 }
 0x13b   : > { %655 = vrot.lane.b32.xlu2 %v650_v12, %s1445_s17  ;;  %653 = vrot.lane.b32.xlu1 %v649_v14, %s1445_s17  ;;  %v424_v12 = vstv %s1796_s27  ;;  %s1901_s27 = sld [smem:[#allocation7 + $0x21]] }
 0x13c   : > { %689 = vrot.lane.b32.xlu0 %v684_v11, %s1445_s17  ;;  %v302_v40 = vadd.f32 %v1708_v38, %v288_v16  ;;  %v322_v38 = vmul.f32 %v321_v15, %v1575_v19  ;;  %v426_v14 = vmul.f32 %v424_v12, %v1587_v25 }
 0x13d   : > { %v379_v18 = vpop.permute.xlu2 %378  ;;  %v296_v22 = vpop.permute.xlu1 %295 }
 0x13e   : > { %v333_v21 = vpop.permute.xlu0 %332  ;;  %v301_v27 = vadd.f32 %v296_v22, %v287_v1  ;;  %v336_v49 = vadd.f32 %v1722_v53, %v322_v38 }
 0x13f   : > { %v337_v23 = vadd.f32 %v333_v21, %v323_v17  ;;  %v819_v21 = vstv %s1802_s3  ;;  %s1911_s3 = sld [smem:[#allocation7 + $0x46]] }
 0x140   : > { %v315_v32 = vadd.f32 %v310_v5, %v301_v27 }
 0x141   : > { %v351_v29 = vadd.f32 %v347_v4, %v337_v23  ;;  %v751_v4 = vstv %s1213_s29  ;;  %v456_v23 = vstv %s1804_s6  ;;  %s1879_s29 = sld [smem:[#allocation7 + $0x3b]] }
 0x142   : > { %318 = vst.msk [vmem:[%s1761_s24] sm:$0xff] %vm317_vm3, %v315_v32  ;;  %v753_v9 = vmul.f32 %v751_v4, %v1587_v25  ;;  %v752_v11 = vmul.f32 %v751_v4, %v1575_v19  ;;  %v458_v27 = vmul.f32 %v456_v23, %v1589_v26  ;;  %v773_v32 = vmul.f32 %v771_v54, %v1589_v26  ;;  %s1238_s6 = sld [smem:[#allocation7 + $0x44]] }
 0x143   : > { %v357_v37 = vadd.f32 %v355_v30, %v351_v29  ;;  %687 = vrot.lane.b32.xlu2 %v683_v34, %s1445_s17  ;;  %675 = vrot.lane.b32.xlu1 %v670_v35, %s1444_s16  ;;  %v820_v29 = vmul.f32 %v819_v21, %v1597_v31  ;;  %v786_v30 = vmul.f32 %v785_v6, %v1577_v20 }
 0x144   : > { %721 = vrot.lane.b32.xlu0 %v717_v33, %s1445_s17 }
 0x145   : > { %v1768_v39 = vpop.permute.xlu2 %400  ;;  %v312_v42 = vpop.permute.xlu1 %311 }
 0x146   : > { %v365_v41 = vpop.permute.xlu0 %364  ;;  %v316_v44 = vadd.f32 %v312_v42, %v302_v40 }
 0x148   : > { %319 = vst.msk [vmem:[%s1761_s24 + $0x8] sm:$0xff] %vm317_vm3, %v316_v44  ;;  %v842_v44 = vmul.f32 %v840_v43, %v1587_v25 }
 0x14b   : > { %709 = vrot.lane.b32.xlu2 %v704_v47, %s1444_s16  ;;  %707 = vrot.lane.b32.xlu1 %v703_v48, %s1444_s16 }
 0x14c   : > { %744 = vrot.lane.b32.xlu0 %v739_v46, %s1444_s16 }
 0x14d   : > { %v1786_v50 = vpop.permute.xlu2 %433  ;;  %v345_v52 = vpop.permute.xlu1 %344 }
 0x14e   : > { %v381_v51 = vpop.permute.xlu0 %380  ;;  %v350_v56 = vadd.f32 %v345_v52, %v336_v49  ;;  %v457_v52 = vmul.f32 %v456_v23, %v1577_v20 }
 0x150   : > { %v356_v57 = vadd.f32 %v354_v55, %v350_v56 }
 0x152   : > { %v370_v53 = vadd.f32 %v365_v41, %v356_v57  ;;  %v805_v41 = vstv %s1218_s7  ;;  %v841_v57 = vmul.f32 %v840_v43, %v1575_v19  ;;  %s1918_s7 = sld [smem:[#allocation7 + $0x24]] }
 0x153   : > { %742 = vrot.lane.b32.xlu2 %v738_v59, %s1444_s16  ;;  %723 = vrot.lane.b32.xlu1 %v718_v60, %s1445_s17  ;;  %v807_v45 = vmul.f32 %v805_v41, %v1606_v36  ;;  %v806_v46 = vmul.f32 %v805_v41, %v1597_v31  ;;  %v490_v59 = vstv %s1840_s23  ;;  %v888_v41 = vstv %s1879_s29  ;;  %s1230_s23 = sld [smem:[#allocation7 + $0x3e]] }
 0x154   : > { %776 = vrot.lane.b32.xlu0 %v772_v58, %s1444_s16  ;;  %v384_v1 = vadd.f32 %v379_v18, %v370_v53  ;;  %v821_v58 = vmul.f32 %v819_v21, %v1606_v36  ;;  %v491_v53 = vmul.f32 %v490_v59, %v1597_v31  ;;  %s1997_s29 = sld [smem:[#allocation7 + $0x3c]] }
 0x155   : > { %v450_v62 = vpop.permute.xlu2 %449  ;;  %v367_v2 = vpop.permute.xlu1 %366 }
 0x156   : > { %v413_v63 = vpop.permute.xlu0 %412  ;;  %v371_v3 = vadd.f32 %v367_v2, %v357_v37  ;;  %v390_v5 = vadd.f32 %v388_v0, %v384_v1  ;;  %v854_v1 = vstv %s1224_s28  ;;  %s1206_s28 = sld [smem:[#allocation7 + $0x2a]] }
 0x157   : > { %v856_v6 = vmul.f32 %v854_v1, %v1587_v25 }
 0x158   : > { %v385_v7 = vadd.f32 %v381_v51, %v371_v3  ;;  %v874_v51 = vstv %s1832_s20  ;;  %v943_v3 = vstv %s1851_s5  ;;  %s1927_s20 = sld [smem:[#allocation7 + $0x27]] }
 0x159   : > { %v875_v56 = vmul.f32 %v874_v51, %v1577_v20  ;;  %s1964_s5 = sld [smem:[#allocation7 + $0x30]] }
 0x15a   : > { %v391_v13 = vadd.f32 %v389_v10, %v385_v7  ;;  %v492_v7 = vmul.f32 %v490_v59, %v1606_v36 }
 0x15b   : > { %758 = vrot.lane.b32.xlu2 %v753_v9, %s1445_s17  ;;  %756 = vrot.lane.b32.xlu1 %v752_v11, %s1445_s17  ;;  %v527_v9 = vstv %s1857_s14  ;;  %s1981_s14 = sld [smem:[#allocation7 + $0x36]] }
 0x15c   : > { %792 = vrot.lane.b32.xlu0 %v787_v8, %s1445_s17  ;;  %v405_v35 = vadd.f32 %v1768_v39, %v391_v13  ;;  %v425_v39 = vmul.f32 %v424_v12, %v1575_v19  ;;  %v855_v8 = vmul.f32 %v854_v1, %v1575_v19  ;;  %v529_v11 = vmul.f32 %v527_v9, %v1587_v25 }
 0x15d   : > { %v482_v15 = vpop.permute.xlu2 %481  ;;  %v399_v17 = vpop.permute.xlu1 %398 }
 0x15e   : > { %v436_v16 = vpop.permute.xlu0 %435  ;;  %v404_v22 = vadd.f32 %v399_v17, %v390_v5  ;;  %v439_v47 = vadd.f32 %v1786_v50, %v425_v39  ;;  %v945_v5 = vmul.f32 %v943_v3, %v1587_v25 }
 0x15f   : > { %v440_v18 = vadd.f32 %v436_v16, %v426_v14  ;;  %v977_v16 = vstv %s1863_s19  ;;  %s1984_s19 = sld [smem:[#allocation7 + $0x39]] }
 0x160   : > { %v418_v28 = vadd.f32 %v413_v63, %v404_v22 }
 0x161   : > { %v454_v24 = vadd.f32 %v450_v62, %v440_v18  ;;  %v559_v18 = vstv %s1865_s25  ;;  %s1989_s25 = sld [smem:[#allocation7 + $0x3f]] }
 0x162   : > { %1176 = vst.msk [vmem:[%s1761_s24 + $0x10] sm:$0xff] %vm317_vm3, %v418_v28  ;;  %v561_v22 = vmul.f32 %v559_v18, %v1589_v26  ;;  %v876_v28 = vmul.f32 %v874_v51, %v1589_v26 }
 0x163   : > { %v460_v33 = vadd.f32 %v458_v27, %v454_v24  ;;  %790 = vrot.lane.b32.xlu2 %v786_v30, %s1445_s17  ;;  %778 = vrot.lane.b32.xlu1 %v773_v32, %s1444_s16  ;;  %v978_v24 = vmul.f32 %v977_v16, %v1577_v20  ;;  %v944_v27 = vmul.f32 %v943_v3, %v1575_v19 }
 0x164   : > { %824 = vrot.lane.b32.xlu0 %v820_v29, %s1445_s17 }
 0x165   : > { %v1829_v34 = vpop.permute.xlu2 %503  ;;  %v415_v40 = vpop.permute.xlu1 %414 }
 0x166   : > { %v468_v37 = vpop.permute.xlu0 %467  ;;  %v419_v42 = vadd.f32 %v415_v40, %v405_v35  ;;  %v957_v40 = vstv %s1235_s26  ;;  %s1993_s26 = sld [smem:[#allocation7 + $0x42]] }
 0x167   : > { %v959_v43 = vmul.f32 %v957_v40, %v1587_v25 }
 0x168   : > { %1177 = vst.msk [vmem:[%s1761_s24 + $0x18] sm:$0xff] %vm317_vm3, %v419_v42  ;;  %v890_v42 = vmul.f32 %v888_v41, %v1589_v26 }
 0x16b   : > { %812 = vrot.lane.b32.xlu2 %v807_v45, %s1444_s16  ;;  %810 = vrot.lane.b32.xlu1 %v806_v46, %s1444_s16 }
 0x16c   : > { %847 = vrot.lane.b32.xlu0 %v842_v44, %s1444_s16  ;;  %v958_v44 = vmul.f32 %v957_v40, %v1575_v19 }
 0x16d   : > { %v1847_v48 = vpop.permute.xlu2 %536  ;;  %v448_v49 = vpop.permute.xlu1 %447 }
 0x16e   : > { %v484_v38 = vpop.permute.xlu0 %483  ;;  %v453_v54 = vadd.f32 %v448_v49, %v439_v47  ;;  %v560_v49 = vmul.f32 %v559_v18, %v1577_v20 }
 0x170   : > { %v459_v55 = vadd.f32 %v457_v52, %v453_v54 }
 0x172   : > { %v473_v50 = vadd.f32 %v468_v37, %v459_v55  ;;  %v889_v55 = vmul.f32 %v888_v41, %v1577_v20 }
 0x173   : > { %845 = vrot.lane.b32.xlu2 %v841_v57, %s1444_s16  ;;  %826 = vrot.lane.b32.xlu1 %v821_v58, %s1445_s17 }
 0x174   : > { %879 = vrot.lane.b32.xlu0 %v875_v56, %s1444_s16  ;;  %v487_v62 = vadd.f32 %v482_v15, %v473_v50  ;;  %v979_v56 = vmul.f32 %v977_v16, %v1589_v26 }
 0x175   : > { %v553_v60 = vpop.permute.xlu2 %552  ;;  %v470_v63 = vpop.permute.xlu1 %469 }
 0x176   : > { %v516_v61 = vpop.permute.xlu0 %515  ;;  %v474_v0 = vadd.f32 %v470_v63, %v460_v33  ;;  %v493_v2 = vadd.f32 %v491_v53, %v487_v62  ;;  %v1011_v53 = vstv %s1911_s3  ;;  %v991_v63 = vstv %s1238_s6 }
 0x177   : > { %v993_v3 = vmul.f32 %v991_v63, %v1589_v26 }
 0x178   : > { %v488_v4 = vadd.f32 %v484_v38, %v474_v0  ;;  %v908_v38 = vstv %s1893_s30  ;;  %s1239_s30 = sld [smem:[#allocation7 + $0x45]] }
 0x179   : > { %v909_v54 = vmul.f32 %v908_v38, %v1597_v31 }
 0x17a   : > { %v494_v10 = vadd.f32 %v492_v7, %v488_v4 }
 0x17b   : > { %861 = vrot.lane.b32.xlu2 %v856_v6, %s1445_s17  ;;  %859 = vrot.lane.b32.xlu1 %v855_v8, %s1445_s17  ;;  %v630_v6 = vstv %s1918_s7 }
 0x17c   : > { %950 = vrot.lane.b32.xlu0 %v945_v5, %s1444_s16  ;;  %v508_v32 = vadd.f32 %v1829_v34, %v494_v10  ;;  %v528_v34 = vmul.f32 %v527_v9, %v1575_v19  ;;  %v992_v5 = vmul.f32 %v991_v63, %v1577_v20  ;;  %v632_v8 = vmul.f32 %v630_v6, %v1587_v25 }
 0x17d   : > { %v585_v12 = vpop.permute.xlu2 %584  ;;  %v502_v14 = vpop.permute.xlu1 %501  ;;  %v631_v41 = vmul.f32 %v630_v6, %v1575_v19  ;;  %v765_v63 = vstv %s1964_s5 }
 0x17e   : > { %v539_v13 = vpop.permute.xlu0 %538  ;;  %v507_v17 = vadd.f32 %v502_v14, %v493_v2  ;;  %v542_v45 = vadd.f32 %v1847_v48, %v528_v34  ;;  %v593_v48 = vstv %s1901_s27  ;;  %v1013_v2 = vmul.f32 %v1011_v53, %v1606_v36  ;;  %s1250_s27 = sshll.u32 %s1484_s13, 7 }
 0x17f   : > { %v543_v15 = vadd.f32 %v539_v13, %v529_v11  ;;  %v594_v50 = vmul.f32 %v593_v48, %v1597_v31  ;;  %v595_v4 = vmul.f32 %v593_v48, %v1606_v36  ;;  %v1025_v13 = vstv %s1925_s8  ;;  %s1053_s7 = scalar_lea.hbm %s2050_s2, %s1250_s27  ;;  %s1054_s8 = sshll.u32 %s1761_s24, 4  ;;  %s1055_s8 = int_to_ptr.vmem [resolvable:$true] %s1054_s8 }
 0x180   : > { %v521_v23 = vadd.f32 %v516_v61, %v507_v17 }
 0x181   : > { %v557_v21 = vadd.f32 %v553_v60, %v543_v15  ;;  %v662_v15 = vstv %s1927_s20  ;;  %s1056_s20 = sshll.u32 %s1053_s7, 4  ;;  %s1057_s20 = int_to_ptr.hbm [resolvable:$true] %s1056_s20 }
 0x182   : > { %1187 = vst.msk [vmem:[%s1761_s24 + $0x20] sm:$0xff] %vm317_vm3, %v521_v23  ;;  %v664_v17 = vmul.f32 %v662_v15, %v1589_v26  ;;  %v910_v23 = vmul.f32 %v908_v38, %v1606_v36  ;;  %v663_v34 = vmul.f32 %v662_v15, %v1577_v20  ;;  %v696_v38 = vstv %s1206_s28  ;;  %s1381_s13 = sshra.s32 %s1057_s20, 4  ;;  %s1382_s13 = int_to_ptr.hbm [resolvable:$true] %s1381_s13 }
 0x183   : > { %v563_v29 = vadd.f32 %v561_v22, %v557_v21  ;;  %948 = vrot.lane.b32.xlu2 %v944_v27, %s1444_s16  ;;  %881 = vrot.lane.b32.xlu1 %v876_v28, %s1444_s16  ;;  %v1026_v21 = vmul.f32 %v1025_v13, %v1597_v31  ;;  %v1012_v22 = vmul.f32 %v1011_v53, %v1597_v31  ;;  %s1383_s28 = scalar_lea.hbm %s1382_s13, 128  ;;  %p1388_p0 = scmp.lt.s32.totalorder %s1382_s13, %s2050_s2 }
 0x184   : > { %982 = vrot.lane.b32.xlu0 %v978_v24, %s1444_s16  ;;  %v698_v48 = vmul.f32 %v696_v38, %v1606_v36  ;;  %p1384_p4 = scmp.ne.s32.totalorder %s1382_s13, %s1383_s28 }
 0x185   : > { %v1890_v30 = vpop.permute.xlu2 %606  ;;  %v518_v35 = vpop.permute.xlu1 %517 }
 0x186   : > { %v571_v33 = vpop.permute.xlu0 %570  ;;  %v522_v37 = vadd.f32 %v518_v35, %v508_v32  ;;  %p1385_p6 = pnand %p1384_p4, %p1515_p11 }
 0x188   : > { %1188 = vst.msk [vmem:[%s1761_s24 + $0x28] sm:$0xff] %vm317_vm3, %v522_v37  ;;  %p1386_p13 = pneg %p1385_p6 }
 0x18b   : > { %964 = vrot.lane.b32.xlu2 %v959_v43, %s1445_s17  ;;  %962 = vrot.lane.b32.xlu1 %v958_v44, %s1445_s17 }
 0x18c   : > { %895 = vrot.lane.b32.xlu0 %v890_v42, %s1445_s17 }
 0x18d   : > { %v1908_v46 = vpop.permute.xlu2 %639  ;;  %v551_v47 = vpop.permute.xlu1 %550 }
 0x18e   : > { %v587_v39 = vpop.permute.xlu0 %586  ;;  %v556_v51 = vadd.f32 %v551_v47, %v542_v45  ;;  %v645_v42 = vadd.f32 %v1908_v46, %v631_v41  ;;  %v1027_v47 = vmul.f32 %v1025_v13, %v1606_v36  ;;  %v697_v46 = vmul.f32 %v696_v38, %v1597_v31  ;;  %v1978_v13 = vld [vmem:[#allocation2 + $0x1] sm:$0xff] }
 0x190   : > { %v562_v52 = vadd.f32 %v560_v49, %v556_v51 }
 0x192   : > { %v576_v57 = vadd.f32 %v571_v33, %v562_v52  ;;  %v922_v33 = vstv %s1230_s23  ;;  %s1042_s23 = scalar_lea.sflag [#allocation5], %s1560_s4 }
 0x193   : > { %893 = vrot.lane.b32.xlu2 %v889_v55, %s1445_s17  ;;  %984 = vrot.lane.b32.xlu1 %v979_v56, %s1444_s16  ;;  %v924_v37 = vmul.f32 %v922_v33, %v1606_v36  ;;  %v923_v40 = vmul.f32 %v922_v33, %v1597_v31 }
 0x194   : > { %913 = vrot.lane.b32.xlu0 %v909_v54, %s1444_s16  ;;  %v590_v60 = vadd.f32 %v585_v12, %v576_v57 }
 0x195   : > { %v656_v58 = vpop.permute.xlu2 %655  ;;  %v573_v61 = vpop.permute.xlu1 %572 }
 0x196   : > { %v619_v59 = vpop.permute.xlu0 %618  ;;  %v577_v62 = vadd.f32 %v573_v61, %v563_v29  ;;  %v596_v0 = vadd.f32 %v594_v50, %v590_v60 }
 0x198   : > { %v591_v1 = vadd.f32 %v587_v39, %v577_v62 }
 0x19a   : > { %v597_v7 = vadd.f32 %v595_v4, %v591_v1  ;;  %v767_v1 = vmul.f32 %v765_v63, %v1589_v26 }
 0x19b   : > { %998 = vrot.lane.b32.xlu2 %v993_v3, %s1445_s17  ;;  %996 = vrot.lane.b32.xlu1 %v992_v5, %s1445_s17 }
 0x19c   : > { %1018 = vrot.lane.b32.xlu0 %v1013_v2, %s1444_s16  ;;  %v611_v28 = vadd.f32 %v1890_v30, %v597_v7 }
 0x19d   : > { %v688_v9 = vpop.permute.xlu2 %687  ;;  %v605_v11 = vpop.permute.xlu1 %604 }
 0x19e   : > { %v642_v10 = vpop.permute.xlu0 %641  ;;  %v610_v14 = vadd.f32 %v605_v11, %v596_v0 }
 0x19f   : > { %v646_v12 = vadd.f32 %v642_v10, %v632_v8 }
 0x1a0   : > { %v624_v18 = vadd.f32 %v619_v59, %v610_v14  ;;  %v766_v14 = vmul.f32 %v1978_v13, %v765_v63 }
 0x1a1   : > { %v660_v16 = vadd.f32 %v656_v58, %v646_v12 }
 0x1a2   : > { %1198 = vst.msk [vmem:[%s1761_s24 + $0x30] sm:$0xff] %vm317_vm3, %v624_v18 }
 0x1a3   : > { %v666_v24 = vadd.f32 %v664_v17, %v660_v16  ;;  %1016 = vrot.lane.b32.xlu2 %v1012_v22, %s1444_s16  ;;  %915 = vrot.lane.b32.xlu1 %v910_v23, %s1444_s16  ;;  %s1960_s16 = sld [smem:[#allocation7 + $0x2d]] }
 0x1a4   : > { %1030 = vrot.lane.b32.xlu0 %v1026_v21, %s1445_s17 }
 0x1a5   : > { %v710_v27 = vpop.permute.xlu2 %709  ;;  %v621_v32 = vpop.permute.xlu1 %620 }
 0x1a6   : > { %v674_v29 = vpop.permute.xlu0 %673  ;;  %v625_v35 = vadd.f32 %v621_v32, %v611_v28 }
 0x1a8   : > { %1199 = vst.msk [vmem:[%s1761_s24 + $0x38] sm:$0xff] %vm317_vm3, %v625_v35  ;;  %v836_v35 = vstv %s1981_s14 }
 0x1a9   : > { %v733_v57 = vstv %s1960_s16 }
 0x1aa   : > { %v735_v59 = vmul.f32 %v733_v57, %v1587_v25  ;;  %v1975_v25 = vld [vmem:[#allocation2] sm:$0xff] }
 0x1ab   : > { %929 = vrot.lane.b32.xlu2 %v924_v37, %s1445_s17  ;;  %927 = vrot.lane.b32.xlu1 %v923_v40, %s1445_s17  ;;  %v1318_v40 = vld [vmem:[#allocation2 + $0x8] sm:$0xff] }
 0x1ac   : > { %v838_v41 = vmul.f32 %v1318_v40, %v836_v35 }
 0x1ad   : > { %v743_v30 = vpop.permute.xlu2 %742  ;;  %v654_v44 = vpop.permute.xlu1 %653 }
 0x1ae   : > { %v690_v43 = vpop.permute.xlu0 %689  ;;  %v659_v45 = vadd.f32 %v654_v44, %v645_v42  ;;  %v868_v44 = vstv %s1984_s19 }
 0x1b0   : > { %v665_v39 = vadd.f32 %v663_v34, %v659_v45 }
 0x1b2   : > { %v679_v19 = vadd.f32 %v674_v29, %v665_v39  ;;  %v1319_v39 = vld [vmem:[#allocation2 + $0x9] sm:$0xff] }
 0x1b3   : > { %1032 = vrot.lane.b32.xlu1 %v1027_v47, %s1445_s17  ;;  %s1217_s17 = sld [smem:[#allocation7 + $0x33]]  ;;  %v870_v47 = vmul.f32 %v1319_v39, %v868_v44 }
 0x1b4   : > { %v693_v52 = vadd.f32 %v688_v9, %v679_v19  ;;  %v734_v9 = vmul.f32 %v1975_v25, %v733_v57 }
 0x1b5   : > { %v759_v49 = vpop.permute.xlu2 %758  ;;  %v676_v54 = vpop.permute.xlu1 %675 }
 0x1b6   : > { %v722_v51 = vpop.permute.xlu0 %721  ;;  %v680_v55 = vadd.f32 %v676_v54, %v666_v24  ;;  %v699_v56 = vadd.f32 %v697_v46, %v693_v52  ;;  %v748_v10 = vadd.f32 %v743_v30, %v734_v9  ;;  %v837_v54 = vmul.f32 %v1975_v25, %v836_v35 }
 0x1b8   : > { %v694_v20 = vadd.f32 %v690_v43, %v680_v55  ;;  %v939_v55 = vstv %s1989_s25 }
 0x1b9   : > { %v799_v17 = vstv %s1217_s17  ;;  %v940_v9 = vmul.f32 %v1975_v25, %v939_v55  ;;  %s1387_s17 = scalar_lea.hbm %s2050_s2, 256 }
 0x1ba   : > { %v700_v58 = vadd.f32 %v698_v48, %v694_v20  ;;  %v800_v22 = vmul.f32 %v799_v17, %v1597_v31  ;;  %v801_v33 = vmul.f32 %v799_v17, %v1606_v36  ;;  %p1389_p3 = scmp.lt.s32.totalorder %s1387_s17, %s1383_s28 }
 0x1bc   : > { %v714_v5 = vadd.f32 %v710_v27, %v700_v58  ;;  %p1390_p5 = por %p1389_p3, %p1388_p0 }
 0x1bd   : > { %v791_v50 = vpop.permute.xlu2 %790  ;;  %v708_v61 = vpop.permute.xlu1 %707 }
 0x1be   : > { %v745_v60 = vpop.permute.xlu0 %744  ;;  %v713_v62 = vadd.f32 %v708_v61, %v699_v56  ;;  %v941_v56 = vmul.f32 %v1318_v40, %v939_v55  ;;  %p1391_p8 = pnand %p1390_p5, %p1386_p13 }
 0x1bf   : > { %v749_v53 = vadd.f32 %v745_v60, %v735_v59  ;;  %v869_v59 = vmul.f32 %v1978_v13, %v868_v44  ;;  %v971_v60 = vstv %s1993_s26 }
 0x1c0   : > { %v727_v2 = vadd.f32 %v722_v51, %v713_v62  ;;  %v972_v17 = vmul.f32 %v1978_v13, %v971_v60 }
 0x1c1   : > { %v763_v0 = vadd.f32 %v759_v49, %v749_v53  ;;  %v973_v53 = vmul.f32 %v1319_v39, %v971_v60 }
 0x1c2   : > { %1209 = vst.msk [vmem:[%s1761_s24 + $0x40] sm:$0xff] %vm317_vm3, %v727_v2 }
 0x1c3   : > { %v769_v3 = vadd.f32 %v767_v1, %v763_v0  ;;  %v902_v0 = vstv %s1997_s29 }
 0x1c5   : > { %v813_v4 = vpop.permute.xlu2 %812  ;;  %v724_v7 = vpop.permute.xlu1 %723 }
 0x1c6   : > { %v777_v6 = vpop.permute.xlu0 %776  ;;  %v728_v8 = vadd.f32 %v724_v7, %v714_v5  ;;  %v1320_v5 = vld [vmem:[#allocation2 + $0x2] sm:$0xff] }
 0x1c8   : > { %1210 = vst.msk [vmem:[%s1761_s24 + $0x48] sm:$0xff] %vm317_vm3, %v728_v8 }
 0x1cd   : > { %v846_v11 = vpop.permute.xlu2 %845  ;;  %v757_v26 = vpop.permute.xlu1 %756 }
 0x1ce   : > { %v793_v12 = vpop.permute.xlu0 %792  ;;  %v762_v15 = vadd.f32 %v757_v26, %v748_v10  ;;  %v851_v20 = vadd.f32 %v846_v11, %v837_v54 }
 0x1d0   : > { %v768_v16 = vadd.f32 %v766_v14, %v762_v15  ;;  %v1321_v15 = vld [vmem:[#allocation2 + $0xa] sm:$0xff] }
 0x1d2   : > { %v782_v18 = vadd.f32 %v777_v6, %v768_v16  ;;  %v903_v6 = vmul.f32 %v1320_v5, %v902_v0  ;;  %v904_v16 = vmul.f32 %v1321_v15, %v902_v0 }
 0x1d4   : > { %v796_v23 = vadd.f32 %v791_v50, %v782_v18 }
 0x1d5   : > { %v862_v24 = vpop.permute.xlu2 %861  ;;  %v779_v27 = vpop.permute.xlu1 %778 }
 0x1d6   : > { %v825_v21 = vpop.permute.xlu0 %824  ;;  %v783_v28 = vadd.f32 %v779_v27, %v769_v3  ;;  %v802_v29 = vadd.f32 %v800_v22, %v796_v23 }
 0x1d8   : > { %v797_v32 = vadd.f32 %v793_v12, %v783_v28  ;;  %v1005_v28 = vstv %s1239_s30 }
 0x1d9   : > { %v1007_v25 = vmul.f32 %v1321_v15, %v1005_v28 }
 0x1da   : > { %v803_v37 = vadd.f32 %v801_v33, %v797_v32 }
 0x1dc   : > { %v817_v36 = vadd.f32 %v813_v4, %v803_v37 }
 0x1dd   : > { %v811_v30 = vpop.permute.xlu1 %810  ;;  %v949_v34 = vpop.permute.xlu2 %948 }
 0x1de   : > { %v848_v42 = vpop.permute.xlu0 %847  ;;  %v816_v31 = vadd.f32 %v811_v30, %v802_v29  ;;  %v954_v11 = vadd.f32 %v949_v34, %v940_v9 }
 0x1df   : > { %v852_v43 = vadd.f32 %v848_v42, %v838_v41  ;;  %v1006_v42 = vmul.f32 %v1320_v5, %v1005_v28 }
 0x1e0   : > { %v830_v38 = vadd.f32 %v825_v21, %v816_v31 }
 0x1e1   : > { %v866_v45 = vadd.f32 %v862_v24, %v852_v43 }
 0x1e2   : > { %1220 = vst.msk [vmem:[%s1761_s24 + $0x50] sm:$0xff] %vm317_vm3, %v830_v38 }
 0x1e3   : > { %v872_v19 = vadd.f32 %v870_v47, %v866_v45 }
 0x1e5   : > { %v827_v51 = vpop.permute.xlu1 %826  ;;  %v965_v52 = vpop.permute.xlu2 %964 }
 0x1e6   : > { %v880_v49 = vpop.permute.xlu0 %879  ;;  %v831_v46 = vadd.f32 %v827_v51, %v817_v36 }
 0x1e8   : > { %1221 = vst.msk [vmem:[%s1761_s24 + $0x58] sm:$0xff] %vm317_vm3, %v831_v46 }
 0x1ed   : > { %v860_v57 = vpop.permute.xlu1 %859  ;;  %v894_v2 = vpop.permute.xlu2 %893 }
 0x1ee   : > { %v951_v48 = vpop.permute.xlu0 %950  ;;  %v865_v50 = vadd.f32 %v860_v57, %v851_v20 }
 0x1ef   : > { %v955_v58 = vadd.f32 %v951_v48, %v941_v56 }
 0x1f0   : > { %v871_v62 = vadd.f32 %v869_v59, %v865_v50 }
 0x1f1   : > { %v969_v61 = vadd.f32 %v965_v52, %v955_v58 }
 0x1f2   : > { %v885_v1 = vadd.f32 %v880_v49, %v871_v62 }
 0x1f3   : > { %v975_v63 = vadd.f32 %v973_v53, %v969_v61 }
 0x1f4   : > { %v899_v4 = vadd.f32 %v894_v2, %v885_v1 }
 0x1f5   : > { %v882_v7 = vpop.permute.xlu1 %881  ;;  %v999_v23 = vpop.permute.xlu2 %998 }
 0x1f6   : > { %v983_v3 = vpop.permute.xlu0 %982  ;;  %v905_v8 = vadd.f32 %v903_v6, %v899_v4  ;;  %v886_v10 = vadd.f32 %v882_v7, %v872_v19 }
 0x1fd   : > { %v963_v26 = vpop.permute.xlu1 %962  ;;  %v1017_v40 = vpop.permute.xlu2 %1016 }
 0x1fe   : > { %v896_v12 = vpop.permute.xlu0 %895  ;;  %v968_v18 = vadd.f32 %v963_v26, %v954_v11 }
 0x1ff   : > { %v900_v14 = vadd.f32 %v896_v12, %v886_v10 }
 0x200   : > { %v974_v22 = vadd.f32 %v972_v17, %v968_v18 }
 0x201   : > { %v906_v21 = vadd.f32 %v904_v16, %v900_v14 }
 0x202   : > { %v988_v35 = vadd.f32 %v983_v3, %v974_v22 }
 0x205   : > { %v985_v27 = vpop.permute.xlu1 %984  ;;  %v930_v39 = vpop.permute.xlu2 %929 }
 0x206   : > { %v914_v24 = vpop.permute.xlu0 %913  ;;  %v989_v29 = vadd.f32 %v985_v27, %v975_v63 }
 0x207   : > { %v919_v38 = vadd.f32 %v914_v24, %v905_v8 }
 0x208   : > { %v1003_v32 = vadd.f32 %v999_v23, %v989_v29 }
 0x20a   : > { %v1009_v33 = vadd.f32 %v1007_v25, %v1003_v32 }
 0x20d   : > { %v997_v41 = vpop.permute.xlu1 %996 }
 0x20e   : > { %v1019_v37 = vpop.permute.xlu0 %1018  ;;  %v1002_v13 = vadd.f32 %v997_v41, %v988_v35 }
 0x20f   : > { %v1023_v49 = vadd.f32 %v1019_v37, %v1009_v33 }
 0x210   : > { %v1008_v30 = vadd.f32 %v1006_v42, %v1002_v13 }
 0x212   : > { %v1022_v43 = vadd.f32 %v1017_v40, %v1008_v30 }
 0x215   : > { %v916_v44 = vpop.permute.xlu1 %915 }
 0x216   : > { %v1031_v31 = vpop.permute.xlu0 %1030  ;;  %v920_v45 = vadd.f32 %v916_v44, %v906_v21 }
 0x217   : > { %v1036_v34 = vadd.f32 %v1031_v31, %v1022_v43 }
 0x218   : > { %v934_v47 = vadd.f32 %v930_v39, %v920_v45 }
 0x219   : > { %1242 = vst.msk [vmem:[%s1761_s24 + $0x70] sm:$0xff] %vm317_vm3, %v1036_v34 }
 0x21a   : > { %1232 = vst.msk [vmem:[%s1761_s24 + $0x68] sm:$0xff] %vm317_vm3, %v934_v47 }
 0x21d   : > { %v928_v19 = vpop.permute.xlu1 %927 }
 0x21e   : > { %v933_v36 = vadd.f32 %v928_v19, %v919_v38 }
 0x220   : > { %1231 = vst.msk [vmem:[%s1761_s24 + $0x60] sm:$0xff] %vm317_vm3, %v933_v36 }
 0x225   : > { %v1033_v51 = vpop.permute.xlu1 %1032 }
 0x226   : > { %v1037_v46 = vadd.f32 %v1033_v51, %v1023_v49 }
 0x228   : > { %1243 = vst.msk [vmem:[%s1761_s24 + $0x78] sm:$0xff] %vm317_vm3, %v1037_v46 }
 0x229   : > { %1394 = shalt.err (!%p1391_p8)
}
 0x22a   : > { %s1446_s4 = smov 128   ;;  %s1447_s24 = smov 8  }
 0x22b   : > { %1257 = dma.vmem_to_hbm [thread:$0]  (%p1515_p11), %s1055_s8, 2048, %s1057_s20, %s1042_s23, %s1446_s4, %s1446_s4, %s1447_s24  }
 0x22c PF: > { %s1071_s25 = sand.u32 1, %s1425_s9   ;;  %p2057_p9 = scmp.ge.s32.totalorder %s1437_s12, 2 }
 0x22d   : > { %s1072_s26 = scalar_lea.sflag [#allocation5], %s1071_s25 }
 0x22e   : > { %p1268_p10 = pnand %p2057_p9, %p1519_p12 }
 0x230   : > { %p1269_p1 = pneg %p1268_p10 }
 0x232   : > { %1420 = dma.done.wait (%p1269_p1), %s1072_s26, 2048  }
 0x233   : > { %1422 = vsyncadd (%p1269_p1), %s1072_s26, 4294965248  ;;  %p16_p2 = scmp.ge.s32.totalorder %s1488_s15, 4   ;;  %s2058_s9 = smov %s1429_s10 }
 0x234   : > { %s2059_s10 = smov %s1433_s11  ;;  %s2060_s11 = smov %s1500_s18 }
 0x235   : > { %s2061_s12 = smov %s1488_s15  ;;  %18 = sbr.rel (!%p16_p2) target bundleno = 6 (0x6), region = 88 }
 0x23a   :  { %1078 = vsyncpa [#allocation4], 1 }
 0x23b   :  { %1080 = vsyncpa [#allocation4 + $0x1], 1 }
 0x23c   :  { %1081 = vsyncpa [#allocation5], 1 }
 0x23d   :  { %1083 = vsyncpa [#allocation5 + $0x1], 1 }
 0x23e   :  { %1084 = vsyncpa [#allocation6], 1 }
 0x23f   :  { %1086 = vsyncpa [#allocation6 + $0x1], 1 }

</bundles_post_ra>
